<compile_context>
chip_gen: v7x
topology: tpu7x:2x2x1
jax: 0.10.0
libtpu: 0.0.40
codegen_flags: <defaults>
</compile_context>

<pallas_src>
import functools

import jax
import jax.numpy as jnp
from jax.experimental import pallas as pl
from jax.experimental.pallas import tpu as pltpu

IN_DIM = 1103
DIMS = [1103, 250, 100, 50, 100, 250, 1103]        # true layer boundary sizes
# Padded boundary sizes: input stays 1103 (full-dim block, no HBM pad pass),
# hidden dims lane-aligned (bottleneck 50 -> 128 per review), output 1103 -> 1152.
PAD_DIMS = [1103, 256, 128, 128, 128, 256, 1152]
NEG_INF = -1e30                                     # finite mask for padded logit cols


def _round_up(x, m):
    return (x + m - 1) // m * m


def _vmem_limit_bytes():
    """~25% headroom below physical VMEM, capped at 100 MiB (v5e/v6e: 128 MiB,
    v7x: 64 MiB -> ~48 MiB requested)."""
    try:
        cap = pltpu.get_tpu_info().vmem_capacity_bytes
        return int(min(0.75 * cap, 100 * (1 << 20)))
    except Exception:
        return 48 * (1 << 20)


def _choose_tile(B, batch_tile):
    """Balanced batch tile: multiple of 16 (bf16 sublane packing), >=2 grid steps
    whenever B allows it (v7x megacore + pipelining), minimal padding waste."""
    mult = 16
    n_steps = max(1, pl.cdiv(B, batch_tile))
    if B > mult:
        n_steps = max(n_steps, 2)
    tile = _round_up(pl.cdiv(B, n_steps), mult)
    return min(tile, _round_up(B, mult))


def _autoencoder_kernel(x_ref,
                        w1, b1, w2, b2, w3, b3, w4, b4, w5, b5, w6, b6,
                        o_ref):
    # bf16 x bf16 on the MXU, f32 accumulation, f32 bias add / ReLU.
    def lin(h, w_ref, b_ref):
        return jnp.dot(h.astype(jnp.bfloat16), w_ref[...],
                       preferred_element_type=jnp.float32) + b_ref[...]

    h = x_ref[...]                      # already bf16 -> layer-1 cast is a no-op
    # Encoder
    h = jnp.maximum(lin(h, w1, b1), 0.0)
    h = jnp.maximum(lin(h, w2, b2), 0.0)
    h = jnp.maximum(lin(h, w3, b3), 0.0)
    # Decoder
    h = jnp.maximum(lin(h, w4, b4), 0.0)
    h = jnp.maximum(lin(h, w5, b5), 0.0)
    logits = lin(h, w6, b6)             # (tile, 1152); padded cols carry -1e30 bias

    # Numerically stable LogSoftmax over the aligned padded width; padded columns
    # contribute exp(-1e30 - m) == 0 to the normalizer, so real columns match
    # log_softmax over the true 1103 logits exactly.
    # NOTE: bf16 exp (v6e/v7x EUP) only if a bundle dump shows EUP binding; v5e has
    # no bf16 EUP path, so keep f32 by default.
    m = jnp.max(logits, axis=-1, keepdims=True)
    shifted = logits - m
    lse = jnp.log(jnp.sum(jnp.exp(shifted), axis=-1, keepdims=True))
    # Store only the 1103 real columns straight into the (B, 1103) output.
    o_ref[...] = (shifted - lse)[:, :IN_DIM].astype(o_ref.dtype)


def prepare_params(params_f32):
    """Pad (in,out)-layout f32 weights/biases to PAD_DIMS, cast weights to bf16
    (biases stay f32), and set the final layer's padded bias columns to NEG_INF so
    log-softmax ignores them.
    # TODO(synk): optionally store w1/w6 in fp8 on v7x (bf16 x fp8 MXU), gated on accuracy.
    """
    prepped = []
    n = len(params_f32)
    for i, (w, b) in enumerate(params_f32):
        din, dout = DIMS[i], DIMS[i + 1]
        pin, pout = PAD_DIMS[i], PAD_DIMS[i + 1]
        wp = jnp.zeros((pin, pout), jnp.float32).at[:din, :dout].set(w)
        pad_val = NEG_INF if i == n - 1 else 0.0
        bp = jnp.full((1, pout), pad_val, jnp.float32).at[:, :dout].set(
            b.reshape(1, -1))
        prepped.append((wp.astype(jnp.bfloat16), bp))
    return prepped


@functools.partial(jax.jit, static_argnames=("batch_tile", "out_dtype"))
def autoencoder_forward(x, prepped_params, *, batch_tile=512,
                        out_dtype=jnp.float32):
    """x: (B, 1103) float32 (or bfloat16). prepped_params: output of prepare_params().
    out_dtype=jnp.bfloat16 halves the output HBM write (useful on v5e) if downstream
    tolerates it; default f32 matches the PyTorch module."""
    B, F = x.shape
    assert F == IN_DIM

    # Cast folded into the jitted wrapper -> fuses with x's producer; halves the
    # input DMA and removes the largest in-kernel VPU cast.
    x_bf16 = x.astype(jnp.bfloat16)

    tile = _choose_tile(B, batch_tile)
    grid = (pl.cdiv(B, tile),)

    flat_params = []
    # Full-minor-dim input block (1103 == full array dim): no feature padding pass.
    in_specs = [pl.BlockSpec((tile, IN_DIM), lambda i: (i, 0))]
    for (w, b) in prepped_params:
        flat_params.extend([w, b])
        # Constant index maps: Mosaic DMAs each weight/bias once and keeps it resident.
        # (pl.Buffered(1) single-buffering skipped: VMEM headroom is ample here.)
        in_specs.append(pl.BlockSpec(w.shape, lambda i: (0, 0)))
        in_specs.append(pl.BlockSpec(b.shape, lambda i: (0, 0)))

    flops = 2 * B * sum(DIMS[i] * DIMS[i + 1] for i in range(len(DIMS) - 1))
    param_bytes = sum(int(w.size) * w.dtype.itemsize + int(b.size) * b.dtype.itemsize
                      for (w, b) in prepped_params)
    out_itemsize = jnp.dtype(out_dtype).itemsize
    cost = pl.CostEstimate(
        flops=int(flops),
        transcendentals=int(B * PAD_DIMS[-1]),
        bytes_accessed=int(2 * B * IN_DIM            # bf16 input read
                           + out_itemsize * B * IN_DIM  # output write
                           + param_bytes),
    )

    out = pl.pallas_call(
        _autoencoder_kernel,
        out_shape=jax.ShapeDtypeStruct((B, IN_DIM), out_dtype),
        grid_spec=pltpu.PrefetchScalarGridSpec(
            num_scalar_prefetch=0,
            grid=grid,
            in_specs=in_specs,
            # Direct (B, 1103) output block: no post-kernel slice round trip.
            out_specs=pl.BlockSpec((tile, IN_DIM), lambda i: (i, 0)),
        ),
        compiler_params=pltpu.CompilerParams(
            dimension_semantics=("parallel",),
            vmem_limit_bytes=_vmem_limit_bytes(),
        ),
        cost_estimate=cost,
    )(x_bf16, *flat_params)

    return out


def init_params(key):
    """Deterministic init matching PyTorch nn.Linear default:
    W, b ~ U(-1/sqrt(in), 1/sqrt(in)). Weights stored as (in, out)."""
    params = []
    for i in range(len(DIMS) - 1):
        din, dout = DIMS[i], DIMS[i + 1]
        key, kw, kb = jax.random.split(key, 3)
        bound = 1.0 / (din ** 0.5)
        w = jax.random.uniform(kw, (din, dout), jnp.float32, -bound, bound)
        b = jax.random.uniform(kb, (dout,), jnp.float32, -bound, bound)
        params.append((w, b))
    return params


def reference_forward_f32(x, params):
    """Pure-f32 reference matching the original PyTorch module semantics."""
    h = x
    for i, (w, b) in enumerate(params):
        h = h @ w + b
        if i < len(params) - 1:
            h = jnp.maximum(h, 0.0)
    return jax.nn.log_softmax(h, axis=-1)


def reference_forward_bf16(x, params):
    """Pure-JAX reference using the same bf16 inputs/weights and f32 accumulation
    as the kernel (isolates kernel correctness from bf16 quantization)."""
    h = x.astype(jnp.bfloat16)
    n = len(params)
    for i, (w, b) in enumerate(params):
        h = jnp.dot(h, w.astype(jnp.bfloat16),
                    preferred_element_type=jnp.float32) + b
        if i < n - 1:
            h = jnp.maximum(h, 0.0).astype(jnp.bfloat16)
    return jax.nn.log_softmax(h, axis=-1)


if __name__ == "__main__":
    key = jax.random.PRNGKey(0)
    kx, kp = jax.random.split(key)

    batch = 16
    x = jax.random.normal(kx, (batch, IN_DIM), jnp.float32)
    params = init_params(kp)
    prepped = prepare_params(params)

    out = autoencoder_forward(x, prepped)
    out = jax.block_until_ready(out)

    assert out.shape == (batch, IN_DIM)
    assert bool(jnp.all(jnp.isfinite(out)))

    # Exact-numerics check (same bf16 inputs/weights, f32 accumulation as the kernel).
    ref_bf16 = reference_forward_bf16(x, params)
    assert jnp.allclose(out, ref_bf16, atol=1e-2, rtol=1e-2), "mismatch vs bf16 reference"

    # Module-semantics check against the full-f32 PyTorch-equivalent forward
    # (loose tolerance accounts for bf16 quantization).
    ref_f32 = reference_forward_f32(x, params)
    assert jnp.allclose(out, ref_f32, atol=1.5e-1, rtol=0.0), "mismatch vs f32 reference"

    print("KERNEL_OK")
</pallas_src>

<mosaic_0001>
module attributes {stable_mosaic.version = 11 : i64} {
  func.func @_autoencoder_kernel(%arg0: i32, %arg1: memref<16x1103xbf16, #tpu.memory_space<vmem>>, %arg2: memref<1103x256xbf16, #tpu.memory_space<vmem>>, %arg3: memref<1x256xf32, #tpu.memory_space<vmem>>, %arg4: memref<256x128xbf16, #tpu.memory_space<vmem>>, %arg5: memref<1x128xf32, #tpu.memory_space<vmem>>, %arg6: memref<128x128xbf16, #tpu.memory_space<vmem>>, %arg7: memref<1x128xf32, #tpu.memory_space<vmem>>, %arg8: memref<128x128xbf16, #tpu.memory_space<vmem>>, %arg9: memref<1x128xf32, #tpu.memory_space<vmem>>, %arg10: memref<128x256xbf16, #tpu.memory_space<vmem>>, %arg11: memref<1x256xf32, #tpu.memory_space<vmem>>, %arg12: memref<256x1152xbf16, #tpu.memory_space<vmem>>, %arg13: memref<1x1152xf32, #tpu.memory_space<vmem>>, %arg14: memref<16x1103xf32, #tpu.memory_space<vmem>>) attributes {dimension_semantics = [#tpu.dimension_semantics<parallel>], iteration_bounds = array<i64: 1>, scalar_prefetch = 0 : i64, scratch_operands = 0 : i64, tpu.core_type = #tpu.core_type<tc>, window_params = [{transform_indices = @transform_0, window_bounds = array<i64: 16, 1103>}, {pipeline_mode = #tpu.pipeline_mode<synchronous>, transform_indices = @transform_1, window_bounds = array<i64: 1103, 256>}, {pipeline_mode = #tpu.pipeline_mode<synchronous>, transform_indices = @transform_2, window_bounds = array<i64: 1, 256>}, {pipeline_mode = #tpu.pipeline_mode<synchronous>, transform_indices = @transform_3, window_bounds = array<i64: 256, 128>}, {pipeline_mode = #tpu.pipeline_mode<synchronous>, transform_indices = @transform_4, window_bounds = array<i64: 1, 128>}, {pipeline_mode = #tpu.pipeline_mode<synchronous>, transform_indices = @transform_5, window_bounds = array<i64: 128, 128>}, {pipeline_mode = #tpu.pipeline_mode<synchronous>, transform_indices = @transform_6, window_bounds = array<i64: 1, 128>}, {pipeline_mode = #tpu.pipeline_mode<synchronous>, transform_indices = @transform_7, window_bounds = array<i64: 128, 128>}, {pipeline_mode = #tpu.pipeline_mode<synchronous>, transform_indices = @transform_8, window_bounds = array<i64: 1, 128>}, {pipeline_mode = #tpu.pipeline_mode<synchronous>, transform_indices = @transform_9, window_bounds = array<i64: 128, 256>}, {pipeline_mode = #tpu.pipeline_mode<synchronous>, transform_indices = @transform_10, window_bounds = array<i64: 1, 256>}, {pipeline_mode = #tpu.pipeline_mode<synchronous>, transform_indices = @transform_11, window_bounds = array<i64: 256, 1152>}, {pipeline_mode = #tpu.pipeline_mode<synchronous>, transform_indices = @transform_12, window_bounds = array<i64: 1, 1152>}, {transform_indices = @transform_13, window_bounds = array<i64: 16, 1103>}]} {
    %c0 = arith.constant 0 : index
    %c0_0 = arith.constant 0 : index
    %0 = vector.load %arg1[%c0, %c0_0] : memref<16x1103xbf16, #tpu.memory_space<vmem>>, vector<16x1103xbf16>
    %c0_1 = arith.constant 0 : index
    %c0_2 = arith.constant 0 : index
    %1 = vector.load %arg2[%c0_1, %c0_2] : memref<1103x256xbf16, #tpu.memory_space<vmem>>, vector<1103x256xbf16>
    %cst = arith.constant dense<0.000000e+00> : vector<16x256xf32>
    %2 = tpu.matmul %0, %1, %cst {dimension_numbers = #tpu.dot_dimension_numbers<[1], [0], [0], [1], [0, 0, 1, 1], [], []>} : vector<16x1103xbf16>, vector<1103x256xbf16>, vector<16x256xf32> -> vector<16x256xf32>
    %c0_3 = arith.constant 0 : index
    %c0_4 = arith.constant 0 : index
    %3 = vector.load %arg3[%c0_3, %c0_4] : memref<1x256xf32, #tpu.memory_space<vmem>>, vector<1x256xf32>
    %4 = vector.broadcast %3 : vector<1x256xf32> to vector<16x256xf32>
    %5 = arith.addf %2, %4 : vector<16x256xf32>
    %cst_5 = arith.constant 0.000000e+00 : f32
    %6 = vector.broadcast %cst_5 : f32 to vector<16x256xf32>
    %7 = arith.maximumf %5, %6 : vector<16x256xf32>
    %8 = arith.truncf %7 : vector<16x256xf32> to vector<16x256xbf16>
    %c0_6 = arith.constant 0 : index
    %c0_7 = arith.constant 0 : index
    %9 = vector.load %arg4[%c0_6, %c0_7] : memref<256x128xbf16, #tpu.memory_space<vmem>>, vector<256x128xbf16>
    %cst_8 = arith.constant dense<0.000000e+00> : vector<16x128xf32>
    %10 = tpu.matmul %8, %9, %cst_8 {dimension_numbers = #tpu.dot_dimension_numbers<[1], [0], [0], [1], [0, 0, 1, 1], [], []>} : vector<16x256xbf16>, vector<256x128xbf16>, vector<16x128xf32> -> vector<16x128xf32>
    %c0_9 = arith.constant 0 : index
    %c0_10 = arith.constant 0 : index
    %11 = vector.load %arg5[%c0_9, %c0_10] : memref<1x128xf32, #tpu.memory_space<vmem>>, vector<1x128xf32>
    %12 = vector.broadcast %11 : vector<1x128xf32> to vector<16x128xf32>
    %13 = arith.addf %10, %12 : vector<16x128xf32>
    %cst_11 = arith.constant 0.000000e+00 : f32
    %14 = vector.broadcast %cst_11 : f32 to vector<16x128xf32>
    %15 = arith.maximumf %13, %14 : vector<16x128xf32>
    %16 = arith.truncf %15 : vector<16x128xf32> to vector<16x128xbf16>
    %c0_12 = arith.constant 0 : index
    %c0_13 = arith.constant 0 : index
    %17 = vector.load %arg6[%c0_12, %c0_13] : memref<128x128xbf16, #tpu.memory_space<vmem>>, vector<128x128xbf16>
    %cst_14 = arith.constant dense<0.000000e+00> : vector<16x128xf32>
    %18 = tpu.matmul %16, %17, %cst_14 {dimension_numbers = #tpu.dot_dimension_numbers<[1], [0], [0], [1], [0, 0, 1, 1], [], []>} : vector<16x128xbf16>, vector<128x128xbf16>, vector<16x128xf32> -> vector<16x128xf32>
    %c0_15 = arith.constant 0 : index
    %c0_16 = arith.constant 0 : index
    %19 = vector.load %arg7[%c0_15, %c0_16] : memref<1x128xf32, #tpu.memory_space<vmem>>, vector<1x128xf32>
    %20 = vector.broadcast %19 : vector<1x128xf32> to vector<16x128xf32>
    %21 = arith.addf %18, %20 : vector<16x128xf32>
    %cst_17 = arith.constant 0.000000e+00 : f32
    %22 = vector.broadcast %cst_17 : f32 to vector<16x128xf32>
    %23 = arith.maximumf %21, %22 : vector<16x128xf32>
    %24 = arith.truncf %23 : vector<16x128xf32> to vector<16x128xbf16>
    %c0_18 = arith.constant 0 : index
    %c0_19 = arith.constant 0 : index
    %25 = vector.load %arg8[%c0_18, %c0_19] : memref<128x128xbf16, #tpu.memory_space<vmem>>, vector<128x128xbf16>
    %cst_20 = arith.constant dense<0.000000e+00> : vector<16x128xf32>
    %26 = tpu.matmul %24, %25, %cst_20 {dimension_numbers = #tpu.dot_dimension_numbers<[1], [0], [0], [1], [0, 0, 1, 1], [], []>} : vector<16x128xbf16>, vector<128x128xbf16>, vector<16x128xf32> -> vector<16x128xf32>
    %c0_21 = arith.constant 0 : index
    %c0_22 = arith.constant 0 : index
    %27 = vector.load %arg9[%c0_21, %c0_22] : memref<1x128xf32, #tpu.memory_space<vmem>>, vector<1x128xf32>
    %28 = vector.broadcast %27 : vector<1x128xf32> to vector<16x128xf32>
    %29 = arith.addf %26, %28 : vector<16x128xf32>
    %cst_23 = arith.constant 0.000000e+00 : f32
    %30 = vector.broadcast %cst_23 : f32 to vector<16x128xf32>
    %31 = arith.maximumf %29, %30 : vector<16x128xf32>
    %32 = arith.truncf %31 : vector<16x128xf32> to vector<16x128xbf16>
    %c0_24 = arith.constant 0 : index
    %c0_25 = arith.constant 0 : index
    %33 = vector.load %arg10[%c0_24, %c0_25] : memref<128x256xbf16, #tpu.memory_space<vmem>>, vector<128x256xbf16>
    %cst_26 = arith.constant dense<0.000000e+00> : vector<16x256xf32>
    %34 = tpu.matmul %32, %33, %cst_26 {dimension_numbers = #tpu.dot_dimension_numbers<[1], [0], [0], [1], [0, 0, 1, 1], [], []>} : vector<16x128xbf16>, vector<128x256xbf16>, vector<16x256xf32> -> vector<16x256xf32>
    %c0_27 = arith.constant 0 : index
    %c0_28 = arith.constant 0 : index
    %35 = vector.load %arg11[%c0_27, %c0_28] : memref<1x256xf32, #tpu.memory_space<vmem>>, vector<1x256xf32>
    %36 = vector.broadcast %35 : vector<1x256xf32> to vector<16x256xf32>
    %37 = arith.addf %34, %36 : vector<16x256xf32>
    %cst_29 = arith.constant 0.000000e+00 : f32
    %38 = vector.broadcast %cst_29 : f32 to vector<16x256xf32>
    %39 = arith.maximumf %37, %38 : vector<16x256xf32>
    %40 = arith.truncf %39 : vector<16x256xf32> to vector<16x256xbf16>
    %c0_30 = arith.constant 0 : index
    %c0_31 = arith.constant 0 : index
    %41 = vector.load %arg12[%c0_30, %c0_31] : memref<256x1152xbf16, #tpu.memory_space<vmem>>, vector<256x1152xbf16>
    %cst_32 = arith.constant dense<0.000000e+00> : vector<16x1152xf32>
    %42 = tpu.matmul %40, %41, %cst_32 {dimension_numbers = #tpu.dot_dimension_numbers<[1], [0], [0], [1], [0, 0, 1, 1], [], []>} : vector<16x256xbf16>, vector<256x1152xbf16>, vector<16x1152xf32> -> vector<16x1152xf32>
    %c0_33 = arith.constant 0 : index
    %c0_34 = arith.constant 0 : index
    %43 = vector.load %arg13[%c0_33, %c0_34] : memref<1x1152xf32, #tpu.memory_space<vmem>>, vector<1x1152xf32>
    %44 = vector.broadcast %43 : vector<1x1152xf32> to vector<16x1152xf32>
    %45 = arith.addf %42, %44 : vector<16x1152xf32>
    %cst_35 = arith.constant dense<0xFF800000> : vector<16xf32>
    %46 = vector.multi_reduction <maximumf>, %45, %cst_35 [1] : vector<16x1152xf32> to vector<16xf32>
    %47 = vector.shape_cast %46 : vector<16xf32> to vector<16x1xf32>
    %48 = vector.broadcast %47 : vector<16x1xf32> to vector<16x1152xf32>
    %49 = arith.subf %45, %48 : vector<16x1152xf32>
    %50 = math.exp %49 : vector<16x1152xf32>
    %cst_36 = arith.constant dense<0.000000e+00> : vector<16xf32>
    %51 = vector.multi_reduction <add>, %50, %cst_36 [1] : vector<16x1152xf32> to vector<16xf32>
    %52 = vector.shape_cast %51 : vector<16xf32> to vector<16x1xf32>
    %53 = math.log %52 : vector<16x1xf32>
    %54 = vector.broadcast %53 : vector<16x1xf32> to vector<16x1152xf32>
    %55 = arith.subf %49, %54 : vector<16x1152xf32>
    %56 = vector.extract_strided_slice %55 {offsets = [0, 0], sizes = [16, 1103], strides = [1, 1]} : vector<16x1152xf32> to vector<16x1103xf32>
    %c0_37 = arith.constant 0 : index
    %c0_38 = arith.constant 0 : index
    %57 = vector.load %arg14[%c0_37, %c0_38] : memref<16x1103xf32, #tpu.memory_space<vmem>>, vector<16x1103xf32>
    tpu.vector_store %arg14[%c0_37, %c0_38], %56 {strides = array<i32>} : memref<16x1103xf32, #tpu.memory_space<vmem>>, vector<16x1103xf32>,
    return
  }
  func.func @transform_0(%arg0: i32) -> (i32, i32) {
    %c0_i32 = arith.constant 0 : i32
    %c0_i32_0 = arith.constant 0 : i32
    return %arg0, %c0_i32 : i32, i32
  }
  func.func @transform_1(%arg0: i32) -> (i32, i32) {
    %c0_i32 = arith.constant 0 : i32
    %c0_i32_0 = arith.constant 0 : i32
    %c0_i32_1 = arith.constant 0 : i32
    return %c0_i32, %c0_i32_0 : i32, i32
  }
  func.func @transform_2(%arg0: i32) -> (i32, i32) {
    %c0_i32 = arith.constant 0 : i32
    %c0_i32_0 = arith.constant 0 : i32
    %c0_i32_1 = arith.constant 0 : i32
    return %c0_i32, %c0_i32_0 : i32, i32
  }
  func.func @transform_3(%arg0: i32) -> (i32, i32) {
    %c0_i32 = arith.constant 0 : i32
    %c0_i32_0 = arith.constant 0 : i32
    %c0_i32_1 = arith.constant 0 : i32
    return %c0_i32, %c0_i32_0 : i32, i32
  }
  func.func @transform_4(%arg0: i32) -> (i32, i32) {
    %c0_i32 = arith.constant 0 : i32
    %c0_i32_0 = arith.constant 0 : i32
    %c0_i32_1 = arith.constant 0 : i32
    return %c0_i32, %c0_i32_0 : i32, i32
  }
  func.func @transform_5(%arg0: i32) -> (i32, i32) {
    %c0_i32 = arith.constant 0 : i32
    %c0_i32_0 = arith.constant 0 : i32
    %c0_i32_1 = arith.constant 0 : i32
    return %c0_i32, %c0_i32_0 : i32, i32
  }
  func.func @transform_6(%arg0: i32) -> (i32, i32) {
    %c0_i32 = arith.constant 0 : i32
    %c0_i32_0 = arith.constant 0 : i32
    %c0_i32_1 = arith.constant 0 : i32
    return %c0_i32, %c0_i32_0 : i32, i32
  }
  func.func @transform_7(%arg0: i32) -> (i32, i32) {
    %c0_i32 = arith.constant 0 : i32
    %c0_i32_0 = arith.constant 0 : i32
    %c0_i32_1 = arith.constant 0 : i32
    return %c0_i32, %c0_i32_0 : i32, i32
  }
  func.func @transform_8(%arg0: i32) -> (i32, i32) {
    %c0_i32 = arith.constant 0 : i32
    %c0_i32_0 = arith.constant 0 : i32
    %c0_i32_1 = arith.constant 0 : i32
    return %c0_i32, %c0_i32_0 : i32, i32
  }
  func.func @transform_9(%arg0: i32) -> (i32, i32) {
    %c0_i32 = arith.constant 0 : i32
    %c0_i32_0 = arith.constant 0 : i32
    %c0_i32_1 = arith.constant 0 : i32
    return %c0_i32, %c0_i32_0 : i32, i32
  }
  func.func @transform_10(%arg0: i32) -> (i32, i32) {
    %c0_i32 = arith.constant 0 : i32
    %c0_i32_0 = arith.constant 0 : i32
    %c0_i32_1 = arith.constant 0 : i32
    return %c0_i32, %c0_i32_0 : i32, i32
  }
  func.func @transform_11(%arg0: i32) -> (i32, i32) {
    %c0_i32 = arith.constant 0 : i32
    %c0_i32_0 = arith.constant 0 : i32
    %c0_i32_1 = arith.constant 0 : i32
    return %c0_i32, %c0_i32_0 : i32, i32
  }
  func.func @transform_12(%arg0: i32) -> (i32, i32) {
    %c0_i32 = arith.constant 0 : i32
    %c0_i32_0 = arith.constant 0 : i32
    %c0_i32_1 = arith.constant 0 : i32
    return %c0_i32, %c0_i32_0 : i32, i32
  }
  func.func @transform_13(%arg0: i32) -> (i32, i32) {
    %c0_i32 = arith.constant 0 : i32
    %c0_i32_0 = arith.constant 0 : i32
    return %arg0, %c0_i32 : i32, i32
  }
}

</mosaic_0001>

<bundles_post_ra>
// kernel: autoencoder_forward.1
= control target key start
LH: loop header
LB: loop body
LE: loop exit
PB: predicated region body
PF: predicated region fallthrough
CT: control target
= control target key end

     0   :  { %18 = vsyncpa [#allocation3], 0  ;;  %s4636_s0 = inlined_call_operand.vmem [shape: bf16[16,1103], index: 0, kind: input, shape index: {}]   ;;  %s4637_s1 = inlined_call_operand.hbm [shape: bf16[1103,256], index: 1, kind: input, shape index: {}]   ;;  %s4638_s2 = inlined_call_operand.vmem [shape: f32[1,256], index: 2, kind: input, shape index: {}]   ;;  %s4639_s3 = inlined_call_operand.vmem [shape: bf16[256,128], index: 3, kind: input, shape index: {}]   ;;  %s4640_s4 = inlined_call_operand.vmem [shape: f32[1,128], index: 4, kind: input, shape index: {}]   ;;  %s4641_s5 = inlined_call_operand.vmem [shape: bf16[128,128], index: 5, kind: input, shape index: {}]   ;;  %s4642_s6 = inlined_call_operand.vmem [shape: f32[1,128], index: 6, kind: input, shape index: {}]   ;;  %s4643_s7 = inlined_call_operand.hbm [shape: bf16[128,128], index: 7, kind: input, shape index: {}]   ;;  %s4644_s8 = inlined_call_operand.vmem [shape: f32[1,128], index: 8, kind: input, shape index: {}]   ;;  %s4645_s9 = inlined_call_operand.hbm [shape: bf16[128,256], index: 9, kind: input, shape index: {}]   ;;  %s4646_s10 = inlined_call_operand.vmem [shape: f32[1,256], index: 10, kind: input, shape index: {}]   ;;  %s4647_s11 = inlined_call_operand.hbm [shape: bf16[256,1152], index: 11, kind: input, shape index: {}]   ;;  %s4648_s12 = inlined_call_operand.vmem [shape: f32[1,1152], index: 12, kind: input, shape index: {}]   ;;  %s4649_s13 = inlined_call_operand.hbm [shape: f32[16,1103], index: 13, kind: output, shape index: {}]  }
   0x1   :  { %19 = vsyncpa [#allocation6], 0 }
   0x2   :  { %20 = vsyncpa [#allocation9], 0 }
   0x3   :  { %21 = vsyncpa [#allocation4], 0  ;;  %s4231_s25 = smov [#allocation5]   ;;  %s4113_s29 = scalar_lea.hbm %s4643_s7, 1024 }
   0x4   :  { %s51_s26 = sshll.u32 %s4231_s25, 4  ;;  %p4114_p0 = scmp.ne.s32.totalorder %s4643_s7, %s4113_s29  ;;  %s52_s26 = int_to_ptr.vmem [resolvable:$true] %s51_s26 }
   0x5   :  { %p4117_p1 = scmp.lt.u32.totalorder %s4113_s29, %s4643_s7 }
   0x7   :  { %p4119_p2 = pnand %p4117_p1, %p4114_p0 }
   0x9   :  { %4122 = shalt.err (!%p4119_p2)
}
   0xa   :  { %s4123_s17 = scalar_lea.vmem %s52_s26, 1024  ;;  %p4128_p4 = scmp.lt.s32.totalorder %s52_s26, %s52_s26 }
   0xb   :  { %p4124_p3 = scmp.ne.s32.totalorder %s52_s26, %s4123_s17  ;;  %p4129_p5 = scmp.lt.s32.totalorder %s4123_s17, %s4123_s17 }
   0xd   :  { %p4130_p6 = por %p4129_p5, %p4128_p4 }
   0xf   :  { %p4131_p7 = pnand %p4130_p6, %p4124_p3 }
  0x11   :  { %4134 = shalt.err (!%p4131_p7)
}
  0x12   :  { %s4232_s18 = smov 64   ;;  %s4233_s19 = smov 4  }
  0x13   :  { %57 = dma.hbm_to_vmem [thread:$0]  %s4643_s7, 1024, %s52_s26, [#allocation6], %s4232_s18, %s4232_s18, %s4233_s19  }
  0x14   :  { %s4234_s22 = smov [#allocation2]   ;;  %s4135_s27 = scalar_lea.hbm %s4637_s1, 17664 }
  0x15   :  { %s29_s23 = sshll.u32 %s4234_s22, 4  ;;  %p4136_p8 = scmp.ne.s32.totalorder %s4637_s1, %s4135_s27  ;;  %s30_s23 = int_to_ptr.vmem [resolvable:$true] %s29_s23 }
  0x16   :  { %p4139_p9 = scmp.lt.u32.totalorder %s4135_s27, %s4637_s1 }
  0x18   :  { %p4141_p10 = pnand %p4139_p9, %p4136_p8 }
  0x1a   :  { %4144 = shalt.err (!%p4141_p10)
}
  0x1b   :  { %s4145_s15 = scalar_lea.vmem %s30_s23, 17664  ;;  %p4150_p12 = scmp.lt.s32.totalorder %s30_s23, %s30_s23 }
  0x1c   :  { %p4146_p11 = scmp.ne.s32.totalorder %s30_s23, %s4145_s15  ;;  %p4151_p13 = scmp.lt.s32.totalorder %s4145_s15, %s4145_s15 }
  0x1e   :  { %p4152_p0 = por %p4151_p13, %p4150_p12 }
  0x20   :  { %p4153_p1 = pnand %p4152_p0, %p4146_p11 }
  0x22   :  { %4156 = shalt.err (!%p4153_p1)
}
  0x23   :  { %s4235_s7 = smov 128   ;;  %s4236_s26 = smov 8  }
  0x24   :  { %35 = dma.hbm_to_vmem [thread:$0]  %s4637_s1, 17664, %s30_s23, [#allocation3], %s4235_s7, %s4235_s7, %s4236_s26  }
  0x25   :  { %s4237_s18 = smov [#allocation7]   ;;  %s4238_s20 = smov [#allocation8]  }
  0x26   :  { %s65_s19 = sshll.u32 %s4237_s18, 4  ;;  %s79_s21 = sshll.u32 %s4238_s20, 4  ;;  %s66_s19 = int_to_ptr.vmem [resolvable:$true] %s65_s19  ;;  %s4342_s21 = int_to_ptr.vmem [resolvable:$true] %s79_s21 }
  0x27   :  { %s4157_s25 = scalar_lea.hbm %s4645_s9, 2048 }
  0x28   :  { %p4158_p2 = scmp.ne.s32.totalorder %s4645_s9, %s4157_s25  ;;  %p4161_p3 = scmp.lt.u32.totalorder %s4157_s25, %s4645_s9 }
  0x2a   :  { %p4163_p4 = pnand %p4161_p3, %p4158_p2 }
  0x2c   :  { %4166 = shalt.err (!%p4163_p4)
}
  0x2d   :  { %s4167_s1 = scalar_lea.vmem %s66_s19, 2048  ;;  %p4172_p6 = scmp.lt.s32.totalorder %s66_s19, %s66_s19 }
  0x2e   :  { %p4168_p5 = scmp.ne.s32.totalorder %s66_s19, %s4167_s1  ;;  %p4173_p7 = scmp.lt.s32.totalorder %s4167_s1, %s4167_s1 }
  0x30   :  { %p4174_p8 = por %p4173_p7, %p4172_p6 }
  0x32   :  { %p4175_p9 = pnand %p4174_p8, %p4168_p5 }
  0x34   :  { %4178 = shalt.err (!%p4175_p9)
}
  0x35   :  { %71 = dma.hbm_to_vmem [thread:$0]  %s4645_s9, 2048, %s66_s19, [#allocation6], %s4235_s7, %s4235_s7, %s4236_s26  }
  0x36   :  { %s4179_s17 = scalar_lea.hbm %s4647_s11, 18432 }
  0x37   :  { %p4180_p10 = scmp.ne.s32.totalorder %s4647_s11, %s4179_s17  ;;  %p4183_p11 = scmp.lt.u32.totalorder %s4179_s17, %s4647_s11 }
  0x39   :  { %p4185_p12 = pnand %p4183_p11, %p4180_p10 }
  0x3b   :  { %4188 = shalt.err (!%p4185_p12)
}
  0x3c   :  { %s4189_s25 = scalar_lea.vmem %s4342_s21, 18432  ;;  %p4194_p0 = scmp.lt.s32.totalorder %s4342_s21, %s4342_s21 }
  0x3d   :  { %p4190_p13 = scmp.ne.s32.totalorder %s4342_s21, %s4189_s25  ;;  %p4195_p1 = scmp.lt.s32.totalorder %s4189_s25, %s4189_s25 }
  0x3f   :  { %p4196_p2 = por %p4195_p1, %p4194_p0 }
  0x41   :  { %p4197_p3 = pnand %p4196_p2, %p4190_p13 }
  0x43   :  { %4200 = shalt.err (!%p4197_p3)
}
  0x44   :  { %s4239_s9 = smov 576   ;;  %s4240_s7 = smov 36  }
  0x45   :  { %85 = dma.hbm_to_vmem [thread:$0]  %s4647_s11, 18432, %s4342_s21, [#allocation9], %s4239_s9, %s4239_s9, %s4240_s7  }
  0x46   :  { %4223 = dma.done.wait [#allocation3], 17664  }
  0x47   :  { %4224 = vsyncadd [#allocation3], 4294949632 }
  0x48   :  { %4225 = dma.done.wait [#allocation6], 3072  }
  0x49   :  { %4226 = vsyncadd [#allocation6], 4294964224 }
  0x4a   :  { %4227 = dma.done.wait [#allocation9], 18432  }
  0x4b   :  { %4228 = vsyncadd [#allocation9], 4294948864  ;;  %v3589_v0 = vld [vmem:[#allocation2 + $0x4] ss:$8 sps:$4 sm:$0xff]   ;;  %v3591_v1 = vld [vmem:[#allocation2] ss:$8 sps:$4 sm:$0xff]  }
  0x4c   :  { %1008 = vmatprep.subr.bf16.mxu0 %v3589_v0  ;;  %v3592_v2 = vld [vmem:[#allocation2 + $0x14] ss:$8 sps:$4 sm:$0xff]   ;;  %v3594_v3 = vld [vmem:[#allocation2 + $0x10] ss:$8 sps:$4 sm:$0xff]   ;;  %v3595_v4 = vld [vmem:[#allocation2 + $0x24] ss:$8 sps:$4 sm:$0xff]  }
  0x4d   :  { %1009 = vmatpush1.bf16.msra.mxu0 %v3591_v1  ;;  %v3597_v5 = vld [vmem:[#allocation2 + $0x20] ss:$8 sps:$4 sm:$0xff]   ;;  %v3598_v6 = vld [vmem:[#allocation2 + $0x34] ss:$8 sps:$4 sm:$0xff]   ;;  %v3600_v7 = vld [vmem:[#allocation2 + $0x30] ss:$8 sps:$4 sm:$0xff]  }
  0x4e   :  { %1010 = vmatprep.subr.bf16.mxu0 %v3592_v2  ;;  %v3601_v8 = vld [vmem:[#allocation2 + $0x44] ss:$8 sps:$4 sm:$0xff]   ;;  %v3603_v9 = vld [vmem:[#allocation2 + $0x40] ss:$8 sps:$4 sm:$0xff]   ;;  %v3604_v10 = vld [vmem:[#allocation2 + $0x54] ss:$8 sps:$4 sm:$0xff]  }
  0x4f   :  { %v3606_v11 = vld [vmem:[#allocation2 + $0x50] ss:$8 sps:$4 sm:$0xff]   ;;  %v3607_v12 = vld [vmem:[#allocation2 + $0x64] ss:$8 sps:$4 sm:$0xff]   ;;  %v3609_v14 = vld [vmem:[#allocation2 + $0x60] ss:$8 sps:$4 sm:$0xff]  }
  0x50   :  { %v3639_v13 = vld [vmem:[%s4636_s0 + $0x4] ss:$36 sps:$4 sm:$0xff]   ;;  %v3610_v15 = vld [vmem:[#allocation2 + $0x74] ss:$8 sps:$4 sm:$0xff]   ;;  %v3612_v16 = vld [vmem:[#allocation2 + $0x70] ss:$8 sps:$4 sm:$0xff]  }
  0x51   :  { %1011 = vmatpush1.bf16.msra.mxu0 %v3594_v3  ;;  %1040 = vmatprep.mubr.bf16.mxu0 %v3639_v13  ;;  %v3613_v17 = vld [vmem:[#allocation2 + $0x84] ss:$8 sps:$4 sm:$0xff]   ;;  %v3615_v18 = vld [vmem:[#allocation2 + $0x80] ss:$8 sps:$4 sm:$0xff]   ;;  %v3616_v19 = vld [vmem:[#allocation2 + $0x94] ss:$8 sps:$4 sm:$0xff]  }
  0x52   :  { %1012 = vmatprep.subr.bf16.mxu0 %v3595_v4  ;;  %v3618_v20 = vld [vmem:[#allocation2 + $0x90] ss:$8 sps:$4 sm:$0xff]   ;;  %v3619_v21 = vld [vmem:[#allocation2 + $0xa4] ss:$8 sps:$4 sm:$0xff]   ;;  %v3621_v22 = vld [vmem:[#allocation2 + $0xa0] ss:$8 sps:$4 sm:$0xff]  }
  0x53   :  { %v3622_v23 = vld [vmem:[#allocation2 + $0xb4] ss:$8 sps:$4 sm:$0xff]   ;;  %v3624_v24 = vld [vmem:[#allocation2 + $0xb0] ss:$8 sps:$4 sm:$0xff]   ;;  %v3625_v25 = vld [vmem:[#allocation2 + $0xc4] ss:$8 sps:$4 sm:$0xff]  }
  0x54   :  { %v3627_v26 = vld [vmem:[#allocation2 + $0xc0] ss:$8 sps:$4 sm:$0xff]   ;;  %v3628_v27 = vld [vmem:[#allocation2 + $0xd4] ss:$8 sps:$4 sm:$0xff]   ;;  %v3630_v28 = vld [vmem:[#allocation2 + $0xd0] ss:$8 sps:$4 sm:$0xff]  }
  0x55   :  { %1013 = vmatpush1.bf16.msra.mxu0 %v3597_v5  ;;  %v3631_v29 = vld [vmem:[#allocation2 + $0xe4] ss:$8 sps:$4 sm:$0xff]   ;;  %v3633_v30 = vld [vmem:[#allocation2 + $0xe0] ss:$8 sps:$4 sm:$0xff]   ;;  %v3634_v31 = vld [vmem:[#allocation2 + $0xf4] ss:$8 sps:$4 sm:$0xff]  }
  0x56   :  { %1014 = vmatprep.subr.bf16.mxu0 %v3598_v6  ;;  %v3636_v32 = vld [vmem:[#allocation2 + $0xf0] ss:$8 sps:$4 sm:$0xff]   ;;  %v3642_v33 = vld [vmem:[#allocation2 + $0x104] ss:$8 sps:$4 sm:$0xff]   ;;  %v3640_v35 = vld [vmem:[#allocation2 + $0x100] ss:$8 sps:$4 sm:$0xff]  }
  0x57   :  { %v3637_v34 = vld [vmem:[%s4636_s0] ss:$36 sps:$4 sm:$0xff]   ;;  %v3690_v36 = vld [vmem:[%s4636_s0 + $0xc] ss:$36 sps:$4 sm:$0xff]   ;;  %v3645_v37 = vld [vmem:[#allocation2 + $0x114] ss:$8 sps:$4 sm:$0xff]  }
  0x58   :  { %v3643_v38 = vld [vmem:[#allocation2 + $0x110] ss:$8 sps:$4 sm:$0xff]   ;;  %v3648_v39 = vld [vmem:[#allocation2 + $0x124] ss:$8 sps:$4 sm:$0xff]   ;;  %v3646_v40 = vld [vmem:[#allocation2 + $0x120] ss:$8 sps:$4 sm:$0xff]  }
  0x59   :  { %1015 = vmatpush1.bf16.msra.mxu0 %v3600_v7  ;;  %v3651_v41 = vld [vmem:[#allocation2 + $0x134] ss:$8 sps:$4 sm:$0xff]   ;;  %v3649_v42 = vld [vmem:[#allocation2 + $0x130] ss:$8 sps:$4 sm:$0xff]   ;;  %v3654_v43 = vld [vmem:[#allocation2 + $0x144] ss:$8 sps:$4 sm:$0xff]  }
  0x5a   :  { %1016 = vmatprep.subr.bf16.mxu0 %v3601_v8  ;;  %v3652_v44 = vld [vmem:[#allocation2 + $0x140] ss:$8 sps:$4 sm:$0xff]   ;;  %v3657_v45 = vld [vmem:[#allocation2 + $0x154] ss:$8 sps:$4 sm:$0xff]   ;;  %v3655_v46 = vld [vmem:[#allocation2 + $0x150] ss:$8 sps:$4 sm:$0xff]  }
  0x5b   :  { %v3660_v47 = vld [vmem:[#allocation2 + $0x164] ss:$8 sps:$4 sm:$0xff]   ;;  %v3658_v48 = vld [vmem:[#allocation2 + $0x160] ss:$8 sps:$4 sm:$0xff]   ;;  %v3663_v49 = vld [vmem:[#allocation2 + $0x174] ss:$8 sps:$4 sm:$0xff]  }
  0x5c   :  { %v3661_v50 = vld [vmem:[#allocation2 + $0x170] ss:$8 sps:$4 sm:$0xff]   ;;  %v3666_v51 = vld [vmem:[#allocation2 + $0x184] ss:$8 sps:$4 sm:$0xff]   ;;  %v3664_v52 = vld [vmem:[#allocation2 + $0x180] ss:$8 sps:$4 sm:$0xff]  }
  0x5d   :  { %1017 = vmatpush1.bf16.msra.mxu0 %v3603_v9  ;;  %v3669_v53 = vld [vmem:[#allocation2 + $0x194] ss:$8 sps:$4 sm:$0xff]   ;;  %v3667_v54 = vld [vmem:[#allocation2 + $0x190] ss:$8 sps:$4 sm:$0xff]   ;;  %v3672_v55 = vld [vmem:[#allocation2 + $0x1a4] ss:$8 sps:$4 sm:$0xff]  }
  0x5e   :  { %1018 = vmatprep.subr.bf16.mxu0 %v3604_v10  ;;  %v3670_v56 = vld [vmem:[#allocation2 + $0x1a0] ss:$8 sps:$4 sm:$0xff]   ;;  %v3675_v57 = vld [vmem:[#allocation2 + $0x1b4] ss:$8 sps:$4 sm:$0xff]   ;;  %v3673_v58 = vld [vmem:[#allocation2 + $0x1b0] ss:$8 sps:$4 sm:$0xff]  }
  0x5f   :  { %v3678_v59 = vld [vmem:[#allocation2 + $0x1c4] ss:$8 sps:$4 sm:$0xff]   ;;  %v3676_v60 = vld [vmem:[#allocation2 + $0x1c0] ss:$8 sps:$4 sm:$0xff]   ;;  %v3681_v61 = vld [vmem:[#allocation2 + $0x1d4] ss:$8 sps:$4 sm:$0xff]  }
  0x60   :  { %v3679_v62 = vld [vmem:[#allocation2 + $0x1d0] ss:$8 sps:$4 sm:$0xff]   ;;  %v3684_v63 = vld [vmem:[#allocation2 + $0x1e4] ss:$8 sps:$4 sm:$0xff]   ;;  %v3682_v0 = vld [vmem:[#allocation2 + $0x1e0] ss:$8 sps:$4 sm:$0xff]  }
  0x61   :  { %1019 = vmatpush1.bf16.msra.mxu0 %v3606_v11  ;;  %v3687_v1 = vld [vmem:[#allocation2 + $0x1f4] ss:$8 sps:$4 sm:$0xff]   ;;  %v3685_v2 = vld [vmem:[#allocation2 + $0x1f0] ss:$8 sps:$4 sm:$0xff]   ;;  %v3693_v3 = vld [vmem:[#allocation2 + $0x204] ss:$8 sps:$4 sm:$0xff]  }
  0x62   :  { %1020 = vmatprep.subr.bf16.mxu0 %v3607_v12  ;;  %v3688_v4 = vld [vmem:[%s4636_s0 + $0x8] ss:$36 sps:$4 sm:$0xff]   ;;  %v3741_v6 = vld [vmem:[%s4636_s0 + $0x14] ss:$36 sps:$4 sm:$0xff]   ;;  %vm998_vm0 = vcmask 1046528   ;;  %vm999_vm1 = vcmask 1047552  }
  0x63   :  { %v3691_v5 = vld [vmem:[#allocation2 + $0x200] ss:$8 sps:$4 sm:$0xff]   ;;  %v3696_v7 = vld [vmem:[#allocation2 + $0x214] ss:$8 sps:$4 sm:$0xff]   ;;  %v3694_v8 = vld [vmem:[#allocation2 + $0x210] ss:$8 sps:$4 sm:$0xff]  }
  0x64   :  { %v3699_v9 = vld [vmem:[#allocation2 + $0x224] ss:$8 sps:$4 sm:$0xff]   ;;  %v3697_v10 = vld [vmem:[#allocation2 + $0x220] ss:$8 sps:$4 sm:$0xff]   ;;  %v3702_v11 = vld [vmem:[#allocation2 + $0x234] ss:$8 sps:$4 sm:$0xff]  }
  0x65   :  { %1021 = vmatpush1.bf16.msra.mxu0 %v3609_v14  ;;  %v3700_v12 = vld [vmem:[#allocation2 + $0x230] ss:$8 sps:$4 sm:$0xff]   ;;  %v3705_v13 = vld [vmem:[#allocation2 + $0x244] ss:$8 sps:$4 sm:$0xff]   ;;  %v3703_v14 = vld [vmem:[#allocation2 + $0x240] ss:$8 sps:$4 sm:$0xff]  }
  0x66   :  { %1022 = vmatprep.subr.bf16.mxu0 %v3610_v15  ;;  %v3708_v15 = vld [vmem:[#allocation2 + $0x254] ss:$8 sps:$4 sm:$0xff]   ;;  %vm994_vm2 = vcmask 646144   ;;  %vm4244_vm3 = vmmov 0  }
  0x69   :  { %1023 = vmatpush1.bf16.msra.mxu0 %v3612_v16  ;;  %v3706_v16 = vld [vmem:[#allocation2 + $0x250] ss:$8 sps:$4 sm:$0xff]  }
  0x6a   :  { %1024 = vmatprep.subr.bf16.mxu0 %v3613_v17  ;;  %v3711_v17 = vld [vmem:[#allocation2 + $0x264] ss:$8 sps:$4 sm:$0xff]  }
  0x6d   :  { %1025 = vmatpush1.bf16.msra.mxu0 %v3615_v18  ;;  %v3809_v18 = vld [vmem:[%s4639_s3 + $0x40] sm:$0xff]  }
  0x6e   :  { %1026 = vmatprep.subr.bf16.mxu0 %v3616_v19  ;;  %v3810_v19 = vld [vmem:[%s4639_s3] sm:$0xff]   ;;  %3450 = vmatprep.subr.bf16.mxu1 %v3809_v18 }
  0x6f   :  { %3451 = vmatpush3.bf16.msra.mxu1 %v3810_v19  ;;  %v3795_v18 = vld [vmem:[#allocation2 + $0x404] ss:$8 sps:$4 sm:$0xff]   ;;  %v3790_v19 = vld [vmem:[%s4636_s0 + $0x18] ss:$36 sps:$4 sm:$0xff]  }
  0x71   :  { %1027 = vmatpush1.bf16.msra.mxu0 %v3618_v20  ;;  %v3811_v20 = vld [vmem:[%s4639_s3 + $0x48] sm:$0xff]  }
  0x72   :  { %1028 = vmatprep.subr.bf16.mxu0 %v3619_v21  ;;  %v3709_v21 = vld [vmem:[#allocation2 + $0x260] ss:$8 sps:$4 sm:$0xff]   ;;  %3452 = vmatprep.subr.bf16.mxu1 %v3811_v20 }
  0x73   :  { %v3793_v20 = vld [vmem:[#allocation2 + $0x400] ss:$8 sps:$4 sm:$0xff]  }
  0x75   :  { %1029 = vmatpush1.bf16.msra.mxu0 %v3621_v22  ;;  %v3714_v22 = vld [vmem:[#allocation2 + $0x274] ss:$8 sps:$4 sm:$0xff]  }
  0x76   :  { %1030 = vmatprep.subr.bf16.mxu0 %v3622_v23  ;;  %v3712_v23 = vld [vmem:[#allocation2 + $0x270] ss:$8 sps:$4 sm:$0xff]  }
  0x79   :  { %1031 = vmatpush1.bf16.msra.mxu0 %v3624_v24  ;;  %v3812_v24 = vld [vmem:[%s4639_s3 + $0x8] sm:$0xff]  }
  0x7a   :  { %1032 = vmatprep.subr.bf16.mxu0 %v3625_v25  ;;  %v3813_v25 = vld [vmem:[%s4639_s3 + $0x50] sm:$0xff]   ;;  %3453 = vmatpush3.bf16.msra.mxu1 %v3812_v24  ;;  %v3801_v24 = vld [vmem:[#allocation2 + $0x424] ss:$8 sps:$4 sm:$0xff]  }
  0x7b   :  { %3454 = vmatprep.subr.bf16.mxu1 %v3813_v25  ;;  %v4242_v25 = vmov 65535  }
  0x7d   :  { %1033 = vmatpush1.bf16.msra.mxu0 %v3627_v26  ;;  %v3717_v26 = vld [vmem:[#allocation2 + $0x284] ss:$8 sps:$4 sm:$0xff]  }
  0x7e   :  { %1034 = vmatprep.subr.bf16.mxu0 %v3628_v27  ;;  %v3814_v27 = vld [vmem:[%s4639_s3 + $0x10] sm:$0xff]  }
  0x7f   :  { %3455 = vmatpush3.bf16.msra.mxu1 %v3814_v27  ;;  %v3799_v27 = vld [vmem:[#allocation2 + $0x420] ss:$8 sps:$4 sm:$0xff]  }
  0x81   :  { %1035 = vmatpush1.bf16.msra.mxu0 %v3630_v28  ;;  %v3815_v28 = vld [vmem:[%s4639_s3 + $0x58] sm:$0xff]  }
  0x82   :  { %1036 = vmatprep.subr.bf16.mxu0 %v3631_v29  ;;  %v3715_v29 = vld [vmem:[#allocation2 + $0x280] ss:$8 sps:$4 sm:$0xff]   ;;  %3456 = vmatprep.subr.bf16.mxu1 %v3815_v28  ;;  %v3804_v28 = vld [vmem:[#allocation2 + $0x434] ss:$8 sps:$4 sm:$0xff]  }
  0x85   :  { %1037 = vmatpush1.bf16.msra.mxu0 %v3633_v30  ;;  %v3720_v30 = vld [vmem:[#allocation2 + $0x294] ss:$8 sps:$4 sm:$0xff]  }
  0x86   :  { %1038 = vmatprep.subr.bf16.mxu0 %v3634_v31  ;;  %v3816_v31 = vld [vmem:[%s4639_s3 + $0x18] sm:$0xff]  }
  0x87   :  { %3457 = vmatpush3.bf16.msra.mxu1 %v3816_v31  ;;  %v3802_v31 = vld [vmem:[#allocation2 + $0x430] ss:$8 sps:$4 sm:$0xff]  }
  0x89   :  { %1039 = vmatpush1.bf16.msra.mxu0 %v3636_v32  ;;  %v3817_v32 = vld [vmem:[%s4639_s3 + $0x60] sm:$0xff]  }
  0x8a   :  { %1051 = vmatprep.subr.bf16.mxu0 %v3642_v33  ;;  %v3718_v33 = vld [vmem:[#allocation2 + $0x290] ss:$8 sps:$4 sm:$0xff]   ;;  %3458 = vmatprep.subr.bf16.mxu1 %v3817_v32  ;;  %v3805_v32 = vld [vmem:[#allocation2 + $0x440] ss:$8 sps:$4 sm:$0xff]  }
  0x8c   :  { %1041 = vmatmul.mubr.bf16.vlgmr.msra.gmra.mrb[0].mxu0 %v3637_v34  ;;  %v3723_v34 = vld [vmem:[#allocation2 + $0x2a4] ss:$8 sps:$4 sm:$0xff]  }
  0x8d   :  { %1052 = vmatpush1.bf16.msra.mxu0 %v3640_v35  ;;  %1083 = vmatprep.mubr.bf16.mxu0 %v3690_v36  ;;  %v3818_v35 = vld [vmem:[%s4639_s3 + $0x20] sm:$0xff]   ;;  %v3819_v36 = vld [vmem:[%s4639_s3 + $0x68] sm:$0xff]  }
  0x8e   :  { %1053 = vmatprep.subr.bf16.mxu0 %v3645_v37  ;;  %v3721_v37 = vld [vmem:[#allocation2 + $0x2a0] ss:$8 sps:$4 sm:$0xff]   ;;  %3459 = vmatpush3.bf16.msra.mxu1 %v3818_v35 }
  0x8f   :  { %3460 = vmatprep.subr.bf16.mxu1 %v3819_v36  ;;  %v3808_v35 = vld [vmem:[%s4636_s0 + $0x20] ss:$36 sps:$4 sm:$0xff]   ;;  %v3820_v36 = vld [vmem:[%s4639_s3 + $0x28] sm:$0xff]  }
  0x91   :  { %1054 = vmatpush1.bf16.msra.mxu0 %v3643_v38  ;;  %v3726_v38 = vld [vmem:[#allocation2 + $0x2b4] ss:$8 sps:$4 sm:$0xff]  }
  0x92   :  { %1055 = vmatprep.subr.bf16.mxu0 %v3648_v39  ;;  %v3724_v39 = vld [vmem:[#allocation2 + $0x2b0] ss:$8 sps:$4 sm:$0xff]   ;;  %3461 = vmatpush3.bf16.msra.mxu1 %v3820_v36 }
  0x95   :  { %1056 = vmatpush1.bf16.msra.mxu0 %v3646_v40  ;;  %v3729_v40 = vld [vmem:[#allocation2 + $0x2c4] ss:$8 sps:$4 sm:$0xff]  }
  0x96   :  { %1057 = vmatprep.subr.bf16.mxu0 %v3651_v41  ;;  %v3727_v41 = vld [vmem:[#allocation2 + $0x2c0] ss:$8 sps:$4 sm:$0xff]  }
  0x99   :  { %1058 = vmatpush1.bf16.msra.mxu0 %v3649_v42  ;;  %v3732_v42 = vld [vmem:[#allocation2 + $0x2d4] ss:$8 sps:$4 sm:$0xff]  }
  0x9a   :  { %1059 = vmatprep.subr.bf16.mxu0 %v3654_v43  ;;  %v3730_v43 = vld [vmem:[#allocation2 + $0x2d0] ss:$8 sps:$4 sm:$0xff]  }
  0x9d   :  { %1060 = vmatpush1.bf16.msra.mxu0 %v3652_v44  ;;  %v3735_v44 = vld [vmem:[#allocation2 + $0x2e4] ss:$8 sps:$4 sm:$0xff]  }
  0x9e   :  { %1061 = vmatprep.subr.bf16.mxu0 %v3657_v45  ;;  %v3733_v45 = vld [vmem:[#allocation2 + $0x2e0] ss:$8 sps:$4 sm:$0xff]  }
  0xa1   :  { %1062 = vmatpush1.bf16.msra.mxu0 %v3655_v46  ;;  %v3738_v46 = vld [vmem:[#allocation2 + $0x2f4] ss:$8 sps:$4 sm:$0xff]  }
  0xa2   :  { %1063 = vmatprep.subr.bf16.mxu0 %v3660_v47  ;;  %v3736_v47 = vld [vmem:[#allocation2 + $0x2f0] ss:$8 sps:$4 sm:$0xff]  }
  0xa5   :  { %1064 = vmatpush1.bf16.msra.mxu0 %v3658_v48  ;;  %v3744_v48 = vld [vmem:[#allocation2 + $0x304] ss:$8 sps:$4 sm:$0xff]  }
  0xa6   :  { %1065 = vmatprep.subr.bf16.mxu0 %v3663_v49  ;;  %v3739_v49 = vld [vmem:[%s4636_s0 + $0x10] ss:$36 sps:$4 sm:$0xff]  }
  0xa9   :  { %1066 = vmatpush1.bf16.msra.mxu0 %v3661_v50  ;;  %v3742_v50 = vld [vmem:[#allocation2 + $0x300] ss:$8 sps:$4 sm:$0xff]  }
  0xaa   :  { %1067 = vmatprep.subr.bf16.mxu0 %v3666_v51  ;;  %v3792_v51 = vld [vmem:[%s4636_s0 + $0x1c] ss:$36 sps:$4 sm:$0xff]  }
  0xad   :  { %1068 = vmatpush1.bf16.msra.mxu0 %v3664_v52  ;;  %v3747_v52 = vld [vmem:[#allocation2 + $0x314] ss:$8 sps:$4 sm:$0xff]  }
  0xae   :  { %1069 = vmatprep.subr.bf16.mxu0 %v3669_v53  ;;  %v3745_v53 = vld [vmem:[#allocation2 + $0x310] ss:$8 sps:$4 sm:$0xff]  }
  0xb1   :  { %1070 = vmatpush1.bf16.msra.mxu0 %v3667_v54  ;;  %v3750_v54 = vld [vmem:[#allocation2 + $0x324] ss:$8 sps:$4 sm:$0xff]  }
  0xb2   :  { %1071 = vmatprep.subr.bf16.mxu0 %v3672_v55  ;;  %v3748_v55 = vld [vmem:[#allocation2 + $0x320] ss:$8 sps:$4 sm:$0xff]  }
  0xb5   :  { %1072 = vmatpush1.bf16.msra.mxu0 %v3670_v56  ;;  %v3753_v56 = vld [vmem:[#allocation2 + $0x334] ss:$8 sps:$4 sm:$0xff]  }
  0xb6   :  { %1073 = vmatprep.subr.bf16.mxu0 %v3675_v57  ;;  %v3751_v57 = vld [vmem:[#allocation2 + $0x330] ss:$8 sps:$4 sm:$0xff]  }
  0xb9   :  { %1074 = vmatpush1.bf16.msra.mxu0 %v3673_v58  ;;  %v3756_v58 = vld [vmem:[#allocation2 + $0x344] ss:$8 sps:$4 sm:$0xff]  }
  0xba   :  { %1075 = vmatprep.subr.bf16.mxu0 %v3678_v59  ;;  %v3754_v59 = vld [vmem:[#allocation2 + $0x340] ss:$8 sps:$4 sm:$0xff]  }
  0xbd   :  { %1076 = vmatpush1.bf16.msra.mxu0 %v3676_v60  ;;  %v3759_v60 = vld [vmem:[#allocation2 + $0x354] ss:$8 sps:$4 sm:$0xff]  }
  0xbe   :  { %1077 = vmatprep.subr.bf16.mxu0 %v3681_v61  ;;  %v3757_v61 = vld [vmem:[#allocation2 + $0x350] ss:$8 sps:$4 sm:$0xff]  }
  0xc1   :  { %1078 = vmatpush1.bf16.msra.mxu0 %v3679_v62  ;;  %v3762_v62 = vld [vmem:[#allocation2 + $0x364] ss:$8 sps:$4 sm:$0xff]  }
  0xc2   :  { %1079 = vmatprep.subr.bf16.mxu0 %v3684_v63  ;;  %v3760_v63 = vld [vmem:[#allocation2 + $0x360] ss:$8 sps:$4 sm:$0xff]  }
  0xc5   :  { %1080 = vmatpush1.bf16.msra.mxu0 %v3682_v0  ;;  %v3765_v0 = vld [vmem:[#allocation2 + $0x374] ss:$8 sps:$4 sm:$0xff]  }
  0xc6   :  { %1081 = vmatprep.subr.bf16.mxu0 %v3687_v1  ;;  %v3763_v1 = vld [vmem:[#allocation2 + $0x370] ss:$8 sps:$4 sm:$0xff]  }
  0xc9   :  { %1082 = vmatpush1.bf16.msra.mxu0 %v3685_v2  ;;  %v3768_v2 = vld [vmem:[#allocation2 + $0x384] ss:$8 sps:$4 sm:$0xff]  }
  0xca   :  { %1094 = vmatprep.subr.bf16.mxu0 %v3693_v3  ;;  %v3766_v3 = vld [vmem:[#allocation2 + $0x380] ss:$8 sps:$4 sm:$0xff]  }
  0xcc   :  { %1084 = vmatmul.mubr.bf16.vlgmr.msra.gmra.mrb[0].mxu0 %v3688_v4  ;;  %v3771_v4 = vld [vmem:[#allocation2 + $0x394] ss:$8 sps:$4 sm:$0xff]  }
  0xcd   :  { %1095 = vmatpush1.bf16.msra.mxu0 %v3691_v5  ;;  %1126 = vmatprep.mubr.bf16.mxu0 %v3741_v6  ;;  %v3769_v5 = vld [vmem:[#allocation2 + $0x390] ss:$8 sps:$4 sm:$0xff]   ;;  %v3774_v6 = vld [vmem:[#allocation2 + $0x3a4] ss:$8 sps:$4 sm:$0xff]  }
  0xce   :  { %1096 = vmatprep.subr.bf16.mxu0 %v3696_v7  ;;  %v3772_v7 = vld [vmem:[#allocation2 + $0x3a0] ss:$8 sps:$4 sm:$0xff]  }
  0xd1   :  { %1097 = vmatpush1.bf16.msra.mxu0 %v3694_v8  ;;  %v3777_v8 = vld [vmem:[#allocation2 + $0x3b4] ss:$8 sps:$4 sm:$0xff]  }
  0xd2   :  { %1098 = vmatprep.subr.bf16.mxu0 %v3699_v9  ;;  %v3775_v9 = vld [vmem:[#allocation2 + $0x3b0] ss:$8 sps:$4 sm:$0xff]  }
  0xd5   :  { %1099 = vmatpush1.bf16.msra.mxu0 %v3697_v10  ;;  %v3780_v10 = vld [vmem:[#allocation2 + $0x3c4] ss:$8 sps:$4 sm:$0xff]  }
  0xd6   :  { %1100 = vmatprep.subr.bf16.mxu0 %v3702_v11  ;;  %v3778_v11 = vld [vmem:[#allocation2 + $0x3c0] ss:$8 sps:$4 sm:$0xff]  }
  0xd9   :  { %1101 = vmatpush1.bf16.msra.mxu0 %v3700_v12  ;;  %v3783_v12 = vld [vmem:[#allocation2 + $0x3d4] ss:$8 sps:$4 sm:$0xff]  }
  0xda   :  { %1102 = vmatprep.subr.bf16.mxu0 %v3705_v13  ;;  %v3781_v13 = vld [vmem:[#allocation2 + $0x3d0] ss:$8 sps:$4 sm:$0xff]  }
  0xdd   :  { %1103 = vmatpush1.bf16.msra.mxu0 %v3703_v14  ;;  %v3786_v14 = vld [vmem:[#allocation2 + $0x3e4] ss:$8 sps:$4 sm:$0xff]  }
  0xde   :  { %1104 = vmatprep.subr.bf16.mxu0 %v3708_v15  ;;  %v3784_v15 = vld [vmem:[#allocation2 + $0x3e0] ss:$8 sps:$4 sm:$0xff]  }
  0xe1   :  { %1105 = vmatpush1.bf16.msra.mxu0 %v3706_v16  ;;  %v3789_v16 = vld [vmem:[#allocation2 + $0x3f4] ss:$8 sps:$4 sm:$0xff]  }
  0xe2   :  { %1106 = vmatprep.subr.bf16.mxu0 %v3711_v17  ;;  %v3787_v17 = vld [vmem:[#allocation2 + $0x3f0] ss:$8 sps:$4 sm:$0xff]  }
  0xe5   :  { %1107 = vmatpush1.bf16.msra.mxu0 %v3709_v21  ;;  %v3798_v21 = vld [vmem:[#allocation2 + $0x414] ss:$8 sps:$4 sm:$0xff]  }
  0xe6   :  { %1108 = vmatprep.subr.bf16.mxu0 %v3714_v22  ;;  %v3796_v22 = vld [vmem:[#allocation2 + $0x410] ss:$8 sps:$4 sm:$0xff]  }
  0xe9   :  { %1109 = vmatpush1.bf16.msra.mxu0 %v3712_v23  ;;  %v4241_v23 = vmov 0  }
  0xea   :  { %1110 = vmatprep.subr.bf16.mxu0 %v3717_v26  ;;  %v1000_v26 = vsel %vm998_vm0, 4294967295, %v4242_v25  ;;  %v3838_v25 = vld [vmem:[#allocation5 + $0x28] sm:$0xff]  }
  0xed   :  { %1111 = vmatpush1.bf16.msra.mxu0 %v3715_v29  ;;  %v3807_v29 = vld [vmem:[#allocation2 + $0x444] ss:$8 sps:$4 sm:$0xff]  }
  0xee   :  { %1112 = vmatprep.subr.bf16.mxu0 %v3720_v30  ;;  %v1001_v30 = vsel %vm999_vm1, %v1000_v26, 0  ;;  %v3839_v26 = vld [vmem:[#allocation5 + $0x30] sm:$0xff]  }
  0xf1   :  { %1113 = vmatpush1.bf16.msra.mxu0 %v3718_v33  ;;  %v1006_v33 = vand.u32 %v3807_v29, %v1001_v30  ;;  %v3271_v29 = vld [vmem:[%s4642_s6] ss:$0 sm:$0xff] }
  0xf2   :  { %1114 = vmatprep.subr.bf16.mxu0 %v3723_v34  ;;  %v1003_v34 = vand.u32 %v3805_v32, %v1001_v30 }
  0xf5   :  { %1115 = vmatpush1.bf16.msra.mxu0 %v3721_v37  ;;  %v3821_v37 = vld [vmem:[%s4639_s3 + $0x70] sm:$0xff]  }
  0xf6   :  { %1116 = vmatprep.subr.bf16.mxu0 %v3726_v38  ;;  %v3822_v38 = vld [vmem:[%s4639_s3 + $0x30] sm:$0xff]   ;;  %3462 = vmatprep.subr.bf16.mxu1 %v3821_v37 }
  0xf7   :  { %3463 = vmatpush3.bf16.msra.mxu1 %v3822_v38  ;;  %v3841_v38 = vld [vmem:[#allocation7] ss:$8 sps:$4 sm:$0xff]  }
  0xf9   :  { %1117 = vmatpush1.bf16.msra.mxu0 %v3724_v39  ;;  %v3823_v39 = vld [vmem:[%s4639_s3 + $0x78] sm:$0xff]  }
  0xfa   :  { %1118 = vmatprep.subr.bf16.mxu0 %v3729_v40  ;;  %v3824_v40 = vld [vmem:[%s4639_s3 + $0x38] sm:$0xff]   ;;  %3464 = vmatprep.subr.bf16.mxu1 %v3823_v39 }
  0xfb   :  { %3465 = vmatpush3.bf16.msra.mxu1 %v3824_v40  ;;  %v3846_v40 = vld [vmem:[#allocation7 + $0x14] ss:$8 sps:$4 sm:$0xff]  }
  0xfd   :  { %1119 = vmatpush1.bf16.msra.mxu0 %v3727_v41  ;;  %v4243_v41 = vmov 0.0  }
  0xfe   :  { %1120 = vmatprep.subr.bf16.mxu0 %v3732_v42  ;;  %3512 = vmatprep.subr.bf16.mxu1 %v4243_v41  ;;  %v251_v42 = vlaneseq }
 0x101   :  { %1121 = vmatpush1.bf16.msra.mxu0 %v3730_v43  ;;  %v4451_v43 = vshrl.u32 %v251_v42, 7  ;;  %v3849_v42 = vld [vmem:[#allocation7 + $0x24] ss:$8 sps:$4 sm:$0xff]  }
 0x102   :  { %1122 = vmatprep.subr.bf16.mxu0 %v3735_v44 }
 0x103   :  { %v4454_v44 = vsub.s32 0, %v4451_v43 }
 0x105   :  { %1123 = vmatpush1.bf16.msra.mxu0 %v3733_v45  ;;  %v249_v45 = vld [vmem:[%s4638_s2] sm:$0x3] }
 0x106   :  { %1124 = vmatprep.subr.bf16.mxu0 %v3738_v46  ;;  %v4460_v46 = vsub.s32 1, %v4451_v43 }
 0x109   :  { %1125 = vmatpush1.bf16.msra.mxu0 %v3736_v47  ;;  %v254_v47 = vrot.slane %v249_v45, %v4454_v44 }
 0x10a   :  { %1137 = vmatprep.subr.bf16.mxu0 %v3744_v48  ;;  %v258_v48 = vrot.slane %v249_v45, %v4460_v46  ;;  %v3847_v45 = vld [vmem:[#allocation7 + $0x20] ss:$8 sps:$4 sm:$0xff]  }
 0x10c   :  { %1127 = vmatmul.mubr.bf16.vlgmr.msra.gmra.mrb[0].mxu0 %v3739_v49 }
 0x10d   :  { %1138 = vmatpush1.bf16.msra.mxu0 %v3742_v50  ;;  %1169 = vmatprep.mubr.bf16.mxu0 %v3792_v51 }
 0x10e   :  { %1139 = vmatprep.subr.bf16.mxu0 %v3747_v52 }
 0x111   :  { %1140 = vmatpush1.bf16.msra.mxu0 %v3745_v53 }
 0x112   :  { %1141 = vmatprep.subr.bf16.mxu0 %v3750_v54 }
 0x115   :  { %1142 = vmatpush1.bf16.msra.mxu0 %v3748_v55 }
 0x116   :  { %1143 = vmatprep.subr.bf16.mxu0 %v3753_v56 }
 0x119   :  { %1144 = vmatpush1.bf16.msra.mxu0 %v3751_v57 }
 0x11a   :  { %1145 = vmatprep.subr.bf16.mxu0 %v3756_v58 }
 0x11d   :  { %1146 = vmatpush1.bf16.msra.mxu0 %v3754_v59 }
 0x11e   :  { %1147 = vmatprep.subr.bf16.mxu0 %v3759_v60 }
 0x121   :  { %1148 = vmatpush1.bf16.msra.mxu0 %v3757_v61 }
 0x122   :  { %1149 = vmatprep.subr.bf16.mxu0 %v3762_v62 }
 0x125   :  { %1150 = vmatpush1.bf16.msra.mxu0 %v3760_v63  ;;  %v3825_v63 = vld [vmem:[%s4641_s5] sm:$0xff]  }
 0x126   :  { %1151 = vmatprep.subr.bf16.mxu0 %v3765_v0  ;;  %v3826_v0 = vld [vmem:[%s4641_s5 + $0x8] sm:$0xff]  }
 0x129   :  { %1152 = vmatpush1.bf16.msra.mxu0 %v3763_v1  ;;  %v3827_v1 = vld [vmem:[%s4641_s5 + $0x10] sm:$0xff]  }
 0x12a   :  { %1153 = vmatprep.subr.bf16.mxu0 %v3768_v2  ;;  %v3828_v2 = vld [vmem:[%s4641_s5 + $0x18] sm:$0xff]  }
 0x12d   :  { %1154 = vmatpush1.bf16.msra.mxu0 %v3766_v3  ;;  %v3829_v3 = vld [vmem:[%s4641_s5 + $0x20] sm:$0xff]  }
 0x12e   :  { %1155 = vmatprep.subr.bf16.mxu0 %v3771_v4  ;;  %v3830_v4 = vld [vmem:[%s4641_s5 + $0x28] sm:$0xff]  }
 0x131   :  { %1156 = vmatpush1.bf16.msra.mxu0 %v3769_v5  ;;  %v3831_v5 = vld [vmem:[%s4641_s5 + $0x30] sm:$0xff]  }
 0x132   :  { %1157 = vmatprep.subr.bf16.mxu0 %v3774_v6  ;;  %v3832_v6 = vld [vmem:[%s4641_s5 + $0x38] sm:$0xff]  }
 0x135   :  { %1158 = vmatpush1.bf16.msra.mxu0 %v3772_v7 }
 0x136   :  { %1159 = vmatprep.subr.bf16.mxu0 %v3777_v8  ;;  %v3254_v8 = vld [vmem:[%s4640_s4] ss:$0 sm:$0xff] }
 0x139   :  { %1160 = vmatpush1.bf16.msra.mxu0 %v3775_v9 }
 0x13a   :  { %1161 = vmatprep.subr.bf16.mxu0 %v3780_v10 }
 0x13d   :  { %1162 = vmatpush1.bf16.msra.mxu0 %v3778_v11 }
 0x13e   :  { %1163 = vmatprep.subr.bf16.mxu0 %v3783_v12 }
 0x141   :  { %1164 = vmatpush1.bf16.msra.mxu0 %v3781_v13 }
 0x142   :  { %1165 = vmatprep.subr.bf16.mxu0 %v3786_v14 }
 0x145   :  { %1166 = vmatpush1.bf16.msra.mxu0 %v3784_v15 }
 0x146   :  { %1167 = vmatprep.subr.bf16.mxu0 %v3789_v16 }
 0x149   :  { %1168 = vmatpush1.bf16.msra.mxu0 %v3787_v17 }
 0x14a   :  { %1180 = vmatprep.subr.bf16.mxu0 %v3795_v18  ;;  %v3833_v18 = vld [vmem:[#allocation5] sm:$0xff]  }
 0x14c   :  { %1170 = vmatmul.mubr.bf16.vlgmr.msra.gmra.mrb[0].mxu0 %v3790_v19 }
 0x14d   :  { %1181 = vmatpush1.bf16.msra.mxu0 %v3793_v20  ;;  %1212 = vmatprep.mubr.bf16.mxu0 %v4241_v23  ;;  %v3834_v20 = vld [vmem:[#allocation5 + $0x8] sm:$0xff]  }
 0x14e   :  { %1182 = vmatprep.subr.bf16.mxu0 %v3798_v21  ;;  %v3835_v21 = vld [vmem:[#allocation5 + $0x10] sm:$0xff]  }
 0x151   :  { %1183 = vmatpush1.bf16.msra.mxu0 %v3796_v22  ;;  %v3836_v22 = vld [vmem:[#allocation5 + $0x18] sm:$0xff]  }
 0x152   :  { %1184 = vmatprep.subr.bf16.mxu0 %v3801_v24  ;;  %v3837_v24 = vld [vmem:[#allocation5 + $0x20] sm:$0xff]  }
 0x155   :  { %1185 = vmatpush1.bf16.msra.mxu0 %v3799_v27  ;;  %v3840_v27 = vld [vmem:[#allocation5 + $0x38] sm:$0xff]  }
 0x156   :  { %1186 = vmatprep.subr.bf16.mxu0 %v3804_v28  ;;  %v3843_v28 = vld [vmem:[#allocation7 + $0x4] ss:$8 sps:$4 sm:$0xff]  }
 0x159   :  { %1187 = vmatpush1.bf16.msra.mxu0 %v3802_v31 }
 0x15a   :  { %1188 = vmatprep.subr.bf16.mxu0 %v1006_v33 }
 0x15d   :  { %1189 = vmatpush1.bf16.msra.mxu0 %v1003_v34 }
 0x160   :  { %3253 = vmatmul.mubr.msk.bf16.vlgmr.msra.gmra.mrb[0].mxu0 %vm994_vm2, %v3808_v35 }
 0x233   :  { %v1214_v49 = vpop.f32.mrb[0].mxu0 }
 0x234   :  { %v3552_v50 = vadd.f32 %v1214_v49, %v254_v47  ;;  %v1216_v51 = vpop.f32.mrb[1].mxu0  ;;  %v3855_v49 = vld [vmem:[#allocation7 + $0x44] ss:$8 sps:$4 sm:$0xff]  }
 0x235   :  { %v3553_v52 = vadd.f32 %v1216_v51, %v258_v48  ;;  %v1218_v53 = vpop.f32.mrb[2].mxu0  ;;  %v3858_v51 = vld [vmem:[#allocation7 + $0x54] ss:$8 sps:$4 sm:$0xff]  }
 0x236   :  { %v3554_v54 = vadd.f32 %v1218_v53, %v254_v47  ;;  %v1220_v55 = vpop.f32.mrb[3].mxu0  ;;  %v1223_v57 = vmax.f32 %v3552_v50, 0.0  ;;  %v3852_v47 = vld [vmem:[#allocation7 + $0x34] ss:$8 sps:$4 sm:$0xff]   ;;  %v3853_v50 = vld [vmem:[#allocation7 + $0x40] ss:$8 sps:$4 sm:$0xff]  }
 0x237   :  { %v3555_v56 = vadd.f32 %v1220_v55, %v258_v48  ;;  %v1224_v59 = vmax.f32 %v3553_v52, 0.0  ;;  %v3850_v48 = vld [vmem:[#allocation7 + $0x30] ss:$8 sps:$4 sm:$0xff]   ;;  %v3861_v53 = vld [vmem:[#allocation7 + $0x64] ss:$8 sps:$4 sm:$0xff]  }
 0x238   :  { %v1225_v58 = vmax.f32 %v3554_v54, 0.0  ;;  %v3856_v52 = vld [vmem:[#allocation7 + $0x50] ss:$8 sps:$4 sm:$0xff]   ;;  %v3864_v54 = vld [vmem:[#allocation7 + $0x74] ss:$8 sps:$4 sm:$0xff]  }
 0x239   :  { %v1226_v60 = vmax.f32 %v3555_v56, 0.0  ;;  %v3862_v55 = vld [vmem:[#allocation7 + $0x70] ss:$8 sps:$4 sm:$0xff]   ;;  %v3867_v56 = vld [vmem:[#allocation8 + $0x4] ss:$36 sps:$4 sm:$0xff]  }
 0x23a   :  { %v1227_v61 = vpack.c.bf16 %v1225_v58, %v1223_v57  ;;  %v3868_v57 = vld [vmem:[#allocation8 + $0x18] ss:$36 sps:$4 sm:$0xff]  }
 0x23b   :  { %v1228_v62 = vpack.c.bf16 %v1226_v60, %v1224_v59  ;;  %v3870_v58 = vld [vmem:[#allocation8 + $0x1c] ss:$36 sps:$4 sm:$0xff]   ;;  %v3876_v60 = vld [vmem:[#allocation8 + $0x64] ss:$36 sps:$4 sm:$0xff]  }
 0x23c   :  { %2869 = vmatprep.subr.bf16.mxu0 %v3870_v58  ;;  %v3874_v59 = vld [vmem:[#allocation8 + $0x60] ss:$36 sps:$4 sm:$0xff]  }
 0x23d   :  { %1396 = vmatprep.mubr.bf16.mxu1 %v1228_v62  ;;  %2870 = vmatpush1.bf16.msra.mxu0 %v3868_v57  ;;  %v3882_v62 = vld [vmem:[#allocation8 + $0xac] ss:$36 sps:$4 sm:$0xff]   ;;  %v3939_v57 = vld [vmem:[#allocation8 + $0x364] ss:$36 sps:$4 sm:$0xff]  }
 0x23e   :  { %1397 = vmatmul.mubr.bf16.vlgmr.msra.gmra.mrb[0].mxu1 %v1227_v61  ;;  %2871 = vmatprep.subr.bf16.mxu0 %v3876_v60  ;;  %v3880_v61 = vld [vmem:[#allocation8 + $0xa8] ss:$36 sps:$4 sm:$0xff]   ;;  %v3937_v58 = vld [vmem:[#allocation8 + $0x360] ss:$36 sps:$4 sm:$0xff]  }
 0x23f   :  { %3513 = vmatpush3.bf16.msra.mxu1 %v3825_v63  ;;  %3528 = vmatprep.mubr.msk.bf16.mxu1 %vm4244_vm3, %v4243_v41  ;;  %v3886_v63 = vld [vmem:[#allocation8 + $0xf0] ss:$36 sps:$4 sm:$0xff]   ;;  %v3943_v60 = vld [vmem:[#allocation8 + $0x3a8] ss:$36 sps:$4 sm:$0xff]  }
 0x240   :  { %3514 = vmatprep.subr.bf16.mxu1 %v4243_v41 }
 0x241   :  { %2872 = vmatpush1.bf16.msra.mxu0 %v3874_v59  ;;  %v3945_v59 = vld [vmem:[#allocation8 + $0x3ac] ss:$36 sps:$4 sm:$0xff]  }
 0x242   :  { %2873 = vmatprep.subr.bf16.mxu0 %v3882_v62  ;;  %v3949_v62 = vld [vmem:[#allocation8 + $0x3f0] ss:$36 sps:$4 sm:$0xff]  }
 0x243   :  { %3515 = vmatpush3.bf16.msra.mxu1 %v3826_v0  ;;  %v3888_v0 = vld [vmem:[#allocation8 + $0xf4] ss:$36 sps:$4 sm:$0xff]  }
 0x244   :  { %3516 = vmatprep.subr.bf16.mxu1 %v4243_v41 }
 0x245   :  { %2874 = vmatpush1.bf16.msra.mxu0 %v3880_v61  ;;  %v3951_v61 = vld [vmem:[#allocation8 + $0x3f4] ss:$36 sps:$4 sm:$0xff]  }
 0x246   :  { %2875 = vmatprep.subr.bf16.mxu0 %v3888_v0  ;;  %v3952_v0 = vld [vmem:[#allocation8 + $0x408] ss:$36 sps:$4 sm:$0xff]  }
 0x247   :  { %3517 = vmatpush3.bf16.msra.mxu1 %v3827_v1  ;;  %v3892_v1 = vld [vmem:[#allocation8 + $0x138] ss:$36 sps:$4 sm:$0xff]  }
 0x248   :  { %3518 = vmatprep.subr.bf16.mxu1 %v4243_v41 }
 0x249   :  { %2876 = vmatpush1.bf16.msra.mxu0 %v3886_v63  ;;  %v3954_v63 = vld [vmem:[#allocation8 + $0x40c] ss:$36 sps:$4 sm:$0xff]  }
 0x24b   :  { %3519 = vmatpush3.bf16.msra.mxu1 %v3828_v2  ;;  %v3894_v2 = vld [vmem:[#allocation8 + $0x13c] ss:$36 sps:$4 sm:$0xff]  }
 0x24c   :  { %3520 = vmatprep.subr.bf16.mxu1 %v4243_v41  ;;  %2877 = vmatprep.subr.bf16.mxu0 %v3894_v2  ;;  %v3955_v2 = vld [vmem:[#allocation8 + $0x438] ss:$36 sps:$4 sm:$0xff]  }
 0x24d   :  { %2878 = vmatpush1.bf16.msra.mxu0 %v3892_v1  ;;  %v3957_v1 = vld [vmem:[#allocation8 + $0x43c] ss:$36 sps:$4 sm:$0xff]  }
 0x24f   :  { %3521 = vmatpush3.bf16.msra.mxu1 %v3829_v3  ;;  %v3898_v3 = vld [vmem:[#allocation8 + $0x180] ss:$36 sps:$4 sm:$0xff]  }
 0x250   :  { %3522 = vmatprep.subr.bf16.mxu1 %v4243_v41 }
 0x253   :  { %3523 = vmatpush3.bf16.msra.mxu1 %v3830_v4  ;;  %v3900_v4 = vld [vmem:[#allocation8 + $0x184] ss:$36 sps:$4 sm:$0xff]  }
 0x254   :  { %3524 = vmatprep.subr.bf16.mxu1 %v4243_v41  ;;  %2879 = vmatprep.subr.bf16.mxu0 %v3900_v4  ;;  %v3958_v4 = vld [vmem:[#allocation8 + $0x450] ss:$36 sps:$4 sm:$0xff]  }
 0x255   :  { %2880 = vmatpush1.bf16.msra.mxu0 %v3898_v3  ;;  %v3960_v3 = vld [vmem:[#allocation8 + $0x454] ss:$36 sps:$4 sm:$0xff]  }
 0x257   :  { %3525 = vmatpush3.bf16.msra.mxu1 %v3831_v5  ;;  %v3904_v5 = vld [vmem:[#allocation8 + $0x1c8] ss:$36 sps:$4 sm:$0xff]  }
 0x258   :  { %3526 = vmatprep.subr.bf16.mxu1 %v4243_v41 }
 0x25b   :  { %3527 = vmatpush3.bf16.msra.mxu1 %v3832_v6  ;;  %v3906_v6 = vld [vmem:[#allocation8 + $0x1cc] ss:$36 sps:$4 sm:$0xff]  }
 0x25c   :  { %3532 = vmatprep.subr.bf16.mxu1 %v4243_v41  ;;  %2881 = vmatprep.subr.bf16.mxu0 %v3906_v6  ;;  %v1654_v6 = vld [vmem:[%s4646_s10] sm:$0x3] }
 0x25d   :  { %2882 = vmatpush1.bf16.msra.mxu0 %v3904_v5  ;;  %v3963_v5 = vld [vmem:[#allocation8 + $0xc] ss:$36 sps:$4 sm:$0xff]  }
 0x311   :  { %v3466_v7 = vpop.f32.mrb[0].mxu1 }
 0x312   :  { %v3467_v9 = vpop.f32.mrb[1].mxu1 }
 0x313   :  { %v3468_v10 = vadd.f32 %v3467_v9, %v3466_v7  ;;  %v3469_v11 = vpop.f32.mrb[2].mxu1  ;;  %v3910_v7 = vld [vmem:[#allocation8 + $0x210] ss:$36 sps:$4 sm:$0xff]   ;;  %v3916_v9 = vld [vmem:[#allocation8 + $0x258] ss:$36 sps:$4 sm:$0xff]  }
 0x314   :  { %v3470_v12 = vpop.f32.mrb[3].mxu1 }
 0x315   :  { %v1399_v13 = vadd.f32 %v3468_v10, %v3254_v8  ;;  %v3471_v14 = vadd.f32 %v3470_v12, %v3469_v11  ;;  %v3918_v10 = vld [vmem:[#allocation8 + $0x25c] ss:$36 sps:$4 sm:$0xff]   ;;  %v3924_v12 = vld [vmem:[#allocation8 + $0x2a4] ss:$36 sps:$4 sm:$0xff]  }
 0x316   :  { %v3922_v11 = vld [vmem:[#allocation8 + $0x2a0] ss:$36 sps:$4 sm:$0xff]  }
 0x317   :  { %v1402_v15 = vadd.f32 %v3471_v14, %v3254_v8  ;;  %v1405_v16 = vmax.f32 %v1399_v13, 0.0  ;;  %v3912_v8 = vld [vmem:[#allocation8 + $0x214] ss:$36 sps:$4 sm:$0xff]   ;;  %v3928_v13 = vld [vmem:[#allocation8 + $0x2e8] ss:$36 sps:$4 sm:$0xff]  }
 0x318   :  { %2883 = vmatprep.subr.bf16.mxu0 %v3912_v8  ;;  %v3930_v14 = vld [vmem:[#allocation8 + $0x2ec] ss:$36 sps:$4 sm:$0xff]   ;;  %v1663_v8 = vrot.slane %v1654_v6, %v4460_v46 }
 0x319   :  { %v1406_v17 = vmax.f32 %v1402_v15, 0.0  ;;  %2884 = vmatpush1.bf16.msra.mxu0 %v3910_v7  ;;  %v3934_v15 = vld [vmem:[#allocation8 + $0x330] ss:$36 sps:$4 sm:$0xff]   ;;  %v1659_v7 = vrot.slane %v1654_v6, %v4454_v44  ;;  %v4027_v6 = vld [vmem:[#allocation8 + $0x1c0] ss:$36 sps:$4 sm:$0xff]  }
 0x31a   :  { %2885 = vmatprep.subr.bf16.mxu0 %v3918_v10 }
 0x31b   :  { %v1407_v19 = vpack.c.bf16 %v1406_v17, %v1405_v16  ;;  %v3936_v16 = vld [vmem:[#allocation8 + $0x334] ss:$36 sps:$4 sm:$0xff]  }
 0x31c   :  { %v3940_v17 = vld [vmem:[#allocation8 + $0x378] ss:$36 sps:$4 sm:$0xff]  }
 0x31d   :  { %3529 = vmatmul.mubr.bf16.vlgmr.msra.gmra.mrb[4].mxu1 %v1407_v19  ;;  %2886 = vmatpush1.bf16.msra.mxu0 %v3916_v9  ;;  %v3946_v19 = vld [vmem:[#allocation8 + $0x3c0] ss:$36 sps:$4 sm:$0xff]  }
 0x31e   :  { %3533 = vmatpush3.bf16.msra.mxu1 %v3833_v18  ;;  %3548 = vmatprep.mubr.msk.bf16.mxu1 %vm4244_vm3, %v4243_v41  ;;  %v3942_v18 = vld [vmem:[#allocation8 + $0x37c] ss:$36 sps:$4 sm:$0xff]  }
 0x31f   :  { %3534 = vmatprep.subr.bf16.mxu1 %v4243_v41  ;;  %2887 = vmatprep.subr.bf16.mxu0 %v3924_v12 }
 0x321   :  { %2888 = vmatpush1.bf16.msra.mxu0 %v3922_v11 }
 0x322   :  { %3535 = vmatpush3.bf16.msra.mxu1 %v3834_v20  ;;  %2889 = vmatprep.subr.bf16.mxu0 %v3930_v14  ;;  %v3948_v20 = vld [vmem:[#allocation8 + $0x3c4] ss:$36 sps:$4 sm:$0xff]  }
 0x323   :  { %3536 = vmatprep.subr.bf16.mxu1 %v4243_v41 }
 0x325   :  { %2890 = vmatpush1.bf16.msra.mxu0 %v3928_v13 }
 0x326   :  { %3537 = vmatpush3.bf16.msra.mxu1 %v3835_v21  ;;  %2891 = vmatprep.subr.bf16.mxu0 %v3936_v16  ;;  %v3280_v21 = vld [vmem:[%s4644_s8] ss:$0 sm:$0xff] }
 0x327   :  { %3538 = vmatprep.subr.bf16.mxu1 %v4243_v41 }
 0x329   :  { %2892 = vmatpush1.bf16.msra.mxu0 %v3934_v15 }
 0x32a   :  { %3539 = vmatpush3.bf16.msra.mxu1 %v3836_v22  ;;  %2893 = vmatprep.subr.bf16.mxu0 %v3942_v18 }
 0x32b   :  { %3540 = vmatprep.subr.bf16.mxu1 %v4243_v41 }
 0x32d   :  { %2894 = vmatpush1.bf16.msra.mxu0 %v3940_v17 }
 0x32e   :  { %3541 = vmatpush3.bf16.msra.mxu1 %v3837_v24  ;;  %2895 = vmatprep.subr.bf16.mxu0 %v3948_v20 }
 0x32f   :  { %3542 = vmatprep.subr.bf16.mxu1 %v4243_v41 }
 0x331   :  { %2896 = vmatpush1.bf16.msra.mxu0 %v3946_v19 }
 0x332   :  { %3543 = vmatpush3.bf16.msra.mxu1 %v3838_v25  ;;  %2897 = vmatprep.subr.bf16.mxu0 %v3954_v63  ;;  %v4020_v63 = vld [vmem:[#allocation8 + $0xec] ss:$36 sps:$4 sm:$0xff]  }
 0x333   :  { %3544 = vmatprep.subr.bf16.mxu1 %v4243_v41 }
 0x335   :  { %2898 = vmatpush1.bf16.msra.mxu0 %v3952_v0  ;;  %v4018_v0 = vld [vmem:[#allocation8 + $0xe8] ss:$36 sps:$4 sm:$0xff]  }
 0x336   :  { %3545 = vmatpush3.bf16.msra.mxu1 %v3839_v26  ;;  %2899 = vmatprep.subr.bf16.mxu0 %v3960_v3  ;;  %v4026_v3 = vld [vmem:[#allocation8 + $0x17c] ss:$36 sps:$4 sm:$0xff]  }
 0x337   :  { %3546 = vmatprep.subr.bf16.mxu1 %v4243_v41  ;;  %v3844_v41 = vld [vmem:[#allocation7 + $0x10] ss:$8 sps:$4 sm:$0xff]  }
 0x339   :  { %2900 = vmatpush1.bf16.msra.mxu0 %v3958_v4  ;;  %v4024_v4 = vld [vmem:[#allocation8 + $0x178] ss:$36 sps:$4 sm:$0xff]  }
 0x33a   :  { %3547 = vmatpush3.bf16.msra.mxu1 %v3840_v27 }
 0x33b   :  { %1746 = vmatprep.subr.bf16.mxu1 %v3843_v28 }
 0x3f0   :  { %v1513_v30 = vpop.f32.mrb[4].mxu1 }
 0x3f1   :  { %v1514_v31 = vadd.f32 %v3271_v29, %v1513_v30  ;;  %v3530_v32 = vpop.f32.mrb[5].mxu1 }
 0x3f2   :  { %v1516_v33 = vpop.f32.mrb[6].mxu1 }
 0x3f3   :  { %v1517_v34 = vadd.f32 %v3271_v29, %v1516_v33  ;;  %v3531_v35 = vpop.f32.mrb[7].mxu1  ;;  %v1520_v36 = vmax.f32 %v1514_v31, 0.0  ;;  %v3865_v31 = vld [vmem:[#allocation8] ss:$36 sps:$4 sm:$0xff]   ;;  %v3873_v33 = vld [vmem:[#allocation8 + $0x4c] ss:$36 sps:$4 sm:$0xff]  }
 0x3f4   :  { %v3879_v35 = vld [vmem:[#allocation8 + $0x94] ss:$36 sps:$4 sm:$0xff]  }
 0x3f5   :  { %v1521_v37 = vmax.f32 %v1517_v34, 0.0  ;;  %v3871_v34 = vld [vmem:[#allocation8 + $0x48] ss:$36 sps:$4 sm:$0xff]  }
 0x3f7   :  { %v1522_v39 = vpack.c.bf16 %v1521_v37, %v1520_v36  ;;  %v3877_v36 = vld [vmem:[#allocation8 + $0x90] ss:$36 sps:$4 sm:$0xff]   ;;  %v3885_v37 = vld [vmem:[#allocation8 + $0xdc] ss:$36 sps:$4 sm:$0xff]  }
 0x3f9   :  { %3549 = vmatmul.mubr.bf16.vlgmr.msra.gmra.mrb[8].mxu1 %v1522_v39  ;;  %v3891_v39 = vld [vmem:[#allocation8 + $0x124] ss:$36 sps:$4 sm:$0xff]  }
 0x3fa   :  { %1747 = vmatpush1.bf16.msra.mxu1 %v3841_v38  ;;  %1778 = vmatprep.mubr.bf16.mxu1 %v4241_v23  ;;  %v3859_v23 = vld [vmem:[#allocation7 + $0x60] ss:$8 sps:$4 sm:$0xff]   ;;  %v3883_v38 = vld [vmem:[#allocation8 + $0xd8] ss:$36 sps:$4 sm:$0xff]  }
 0x3fb   :  { %1748 = vmatprep.subr.bf16.mxu1 %v3846_v40  ;;  %v3889_v40 = vld [vmem:[#allocation8 + $0x120] ss:$36 sps:$4 sm:$0xff]  }
 0x3fe   :  { %1749 = vmatpush1.bf16.msra.mxu1 %v3844_v41  ;;  %v3897_v41 = vld [vmem:[#allocation8 + $0x16c] ss:$36 sps:$4 sm:$0xff]  }
 0x3ff   :  { %1750 = vmatprep.subr.bf16.mxu1 %v3849_v42  ;;  %v3895_v42 = vld [vmem:[#allocation8 + $0x168] ss:$36 sps:$4 sm:$0xff]  }
 0x402   :  { %1751 = vmatpush1.bf16.msra.mxu1 %v3847_v45  ;;  %v3903_v45 = vld [vmem:[#allocation8 + $0x1b4] ss:$36 sps:$4 sm:$0xff]  }
 0x403   :  { %1752 = vmatprep.subr.bf16.mxu1 %v3852_v47  ;;  %v3901_v47 = vld [vmem:[#allocation8 + $0x1b0] ss:$36 sps:$4 sm:$0xff]  }
 0x406   :  { %1753 = vmatpush1.bf16.msra.mxu1 %v3850_v48  ;;  %v3909_v48 = vld [vmem:[#allocation8 + $0x1fc] ss:$36 sps:$4 sm:$0xff]  }
 0x407   :  { %1754 = vmatprep.subr.bf16.mxu1 %v3855_v49  ;;  %v3907_v49 = vld [vmem:[#allocation8 + $0x1f8] ss:$36 sps:$4 sm:$0xff]  }
 0x40a   :  { %1755 = vmatpush1.bf16.msra.mxu1 %v3853_v50  ;;  %v3915_v50 = vld [vmem:[#allocation8 + $0x244] ss:$36 sps:$4 sm:$0xff]  }
 0x40b   :  { %1756 = vmatprep.subr.bf16.mxu1 %v3858_v51  ;;  %v3913_v51 = vld [vmem:[#allocation8 + $0x240] ss:$36 sps:$4 sm:$0xff]  }
 0x40e   :  { %1757 = vmatpush1.bf16.msra.mxu1 %v3856_v52  ;;  %v3921_v52 = vld [vmem:[#allocation8 + $0x28c] ss:$36 sps:$4 sm:$0xff]  }
 0x40f   :  { %1758 = vmatprep.subr.bf16.mxu1 %v3861_v53  ;;  %v3919_v53 = vld [vmem:[#allocation8 + $0x288] ss:$36 sps:$4 sm:$0xff]  }
 0x412   :  { %1759 = vmatpush1.bf16.msra.mxu1 %v3859_v23  ;;  %v3927_v23 = vld [vmem:[#allocation8 + $0x2d4] ss:$36 sps:$4 sm:$0xff]  }
 0x413   :  { %1760 = vmatprep.subr.bf16.mxu1 %v3864_v54  ;;  %v3925_v54 = vld [vmem:[#allocation8 + $0x2d0] ss:$36 sps:$4 sm:$0xff]  }
 0x416   :  { %1761 = vmatpush1.bf16.msra.mxu1 %v3862_v55  ;;  %v3933_v55 = vld [vmem:[#allocation8 + $0x31c] ss:$36 sps:$4 sm:$0xff]  }
 0x417   :  { %2740 = vmatprep.subr.bf16.mxu1 %v3867_v56  ;;  %v3931_v56 = vld [vmem:[#allocation8 + $0x318] ss:$36 sps:$4 sm:$0xff]  }
 0x4cc   :  { %v1628_v22 = vpop.f32.mrb[8].mxu1 }
 0x4cd   :  { %v1629_v24 = vadd.f32 %v3280_v21, %v1628_v22  ;;  %v3550_v25 = vpop.f32.mrb[9].mxu1 }
 0x4ce   :  { %v1631_v26 = vpop.f32.mrb[10].mxu1  ;;  %v3966_v25 = vld [vmem:[#allocation8 + $0x54] ss:$36 sps:$4 sm:$0xff]  }
 0x4cf   :  { %v1632_v27 = vadd.f32 %v3280_v21, %v1631_v26  ;;  %v3551_v28 = vpop.f32.mrb[11].mxu1  ;;  %v1635_v29 = vmax.f32 %v1629_v24, 0.0  ;;  %v3961_v24 = vld [vmem:[#allocation8 + $0x8] ss:$36 sps:$4 sm:$0xff]   ;;  %v3964_v26 = vld [vmem:[#allocation8 + $0x50] ss:$36 sps:$4 sm:$0xff]  }
 0x4d0   :  { %v3967_v28 = vld [vmem:[#allocation8 + $0x98] ss:$36 sps:$4 sm:$0xff]  }
 0x4d1   :  { %v1636_v30 = vmax.f32 %v1632_v27, 0.0  ;;  %v3969_v27 = vld [vmem:[#allocation8 + $0x9c] ss:$36 sps:$4 sm:$0xff]  }
 0x4d3   :  { %v1637_v32 = vpack.c.bf16 %v1636_v30, %v1635_v29  ;;  %v3972_v29 = vld [vmem:[#allocation8 + $0xe4] ss:$36 sps:$4 sm:$0xff]  }
 0x4d4   :  { %v3970_v30 = vld [vmem:[#allocation8 + $0xe0] ss:$36 sps:$4 sm:$0xff]  }
 0x4d5   :  { %1779 = vmatmul.mubr.bf16.vlgmr.msra.gmra.mrb[12].mxu1 %v1637_v32  ;;  %v3973_v32 = vld [vmem:[#allocation8 + $0x128] ss:$36 sps:$4 sm:$0xff]  }
 0x4d6   :  { %2741 = vmatpush1.bf16.msra.mxu1 %v3865_v31  ;;  %v3975_v31 = vld [vmem:[#allocation8 + $0x12c] ss:$36 sps:$4 sm:$0xff]  }
 0x4d7   :  { %2742 = vmatprep.subr.bf16.mxu1 %v3873_v33  ;;  %v3978_v33 = vld [vmem:[#allocation8 + $0x174] ss:$36 sps:$4 sm:$0xff]  }
 0x4da   :  { %2743 = vmatpush1.bf16.msra.mxu1 %v3871_v34  ;;  %v3976_v34 = vld [vmem:[#allocation8 + $0x170] ss:$36 sps:$4 sm:$0xff]  }
 0x4db   :  { %2744 = vmatprep.subr.bf16.mxu1 %v3879_v35  ;;  %v3981_v35 = vld [vmem:[#allocation8 + $0x1bc] ss:$36 sps:$4 sm:$0xff]  }
 0x4de   :  { %2745 = vmatpush1.bf16.msra.mxu1 %v3877_v36  ;;  %v3979_v36 = vld [vmem:[#allocation8 + $0x1b8] ss:$36 sps:$4 sm:$0xff]  }
 0x4df   :  { %2746 = vmatprep.subr.bf16.mxu1 %v3885_v37  ;;  %v3984_v37 = vld [vmem:[#allocation8 + $0x204] ss:$36 sps:$4 sm:$0xff]  }
 0x4e2   :  { %2747 = vmatpush1.bf16.msra.mxu1 %v3883_v38  ;;  %v3982_v38 = vld [vmem:[#allocation8 + $0x200] ss:$36 sps:$4 sm:$0xff]  }
 0x4e3   :  { %2748 = vmatprep.subr.bf16.mxu1 %v3891_v39  ;;  %v3987_v39 = vld [vmem:[#allocation8 + $0x24c] ss:$36 sps:$4 sm:$0xff]  }
 0x4e6   :  { %2749 = vmatpush1.bf16.msra.mxu1 %v3889_v40  ;;  %v3985_v40 = vld [vmem:[#allocation8 + $0x248] ss:$36 sps:$4 sm:$0xff]  }
 0x4e7   :  { %2750 = vmatprep.subr.bf16.mxu1 %v3897_v41  ;;  %v3990_v41 = vld [vmem:[#allocation8 + $0x294] ss:$36 sps:$4 sm:$0xff]  }
 0x4ea   :  { %2751 = vmatpush1.bf16.msra.mxu1 %v3895_v42  ;;  %v3988_v42 = vld [vmem:[#allocation8 + $0x290] ss:$36 sps:$4 sm:$0xff]  }
 0x4eb   :  { %2752 = vmatprep.subr.bf16.mxu1 %v3903_v45  ;;  %v3993_v45 = vld [vmem:[#allocation8 + $0x2dc] ss:$36 sps:$4 sm:$0xff]  }
 0x4ee   :  { %2753 = vmatpush1.bf16.msra.mxu1 %v3901_v47  ;;  %v3991_v47 = vld [vmem:[#allocation8 + $0x2d8] ss:$36 sps:$4 sm:$0xff]  }
 0x4ef   :  { %2754 = vmatprep.subr.bf16.mxu1 %v3909_v48  ;;  %v3996_v48 = vld [vmem:[#allocation8 + $0x324] ss:$36 sps:$4 sm:$0xff]  }
 0x4f2   :  { %2755 = vmatpush1.bf16.msra.mxu1 %v3907_v49  ;;  %v3994_v49 = vld [vmem:[#allocation8 + $0x320] ss:$36 sps:$4 sm:$0xff]  }
 0x4f3   :  { %2756 = vmatprep.subr.bf16.mxu1 %v3915_v50  ;;  %v3999_v50 = vld [vmem:[#allocation8 + $0x36c] ss:$36 sps:$4 sm:$0xff]  }
 0x4f6   :  { %2757 = vmatpush1.bf16.msra.mxu1 %v3913_v51  ;;  %v3997_v51 = vld [vmem:[#allocation8 + $0x368] ss:$36 sps:$4 sm:$0xff]  }
 0x4f7   :  { %2758 = vmatprep.subr.bf16.mxu1 %v3921_v52  ;;  %v4002_v52 = vld [vmem:[#allocation8 + $0x3b4] ss:$36 sps:$4 sm:$0xff]  }
 0x4fa   :  { %2759 = vmatpush1.bf16.msra.mxu1 %v3919_v53  ;;  %v4000_v53 = vld [vmem:[#allocation8 + $0x3b0] ss:$36 sps:$4 sm:$0xff]  }
 0x4fb   :  { %2760 = vmatprep.subr.bf16.mxu1 %v3927_v23  ;;  %v4005_v23 = vld [vmem:[#allocation8 + $0x3fc] ss:$36 sps:$4 sm:$0xff]  }
 0x4fe   :  { %2761 = vmatpush1.bf16.msra.mxu1 %v3925_v54  ;;  %v4003_v54 = vld [vmem:[#allocation8 + $0x3f8] ss:$36 sps:$4 sm:$0xff]  }
 0x4ff   :  { %2762 = vmatprep.subr.bf16.mxu1 %v3933_v55  ;;  %v4008_v55 = vld [vmem:[#allocation8 + $0x444] ss:$36 sps:$4 sm:$0xff]  }
 0x502   :  { %2763 = vmatpush1.bf16.msra.mxu1 %v3931_v56  ;;  %v4006_v56 = vld [vmem:[#allocation8 + $0x440] ss:$36 sps:$4 sm:$0xff]  }
 0x503   :  { %2764 = vmatprep.subr.bf16.mxu1 %v3939_v57  ;;  %v4011_v57 = vld [vmem:[#allocation8 + $0x14] ss:$36 sps:$4 sm:$0xff]  }
 0x506   :  { %2765 = vmatpush1.bf16.msra.mxu1 %v3937_v58  ;;  %v4009_v58 = vld [vmem:[#allocation8 + $0x10] ss:$36 sps:$4 sm:$0xff]  }
 0x507   :  { %2766 = vmatprep.subr.bf16.mxu1 %v3945_v59  ;;  %v4014_v59 = vld [vmem:[#allocation8 + $0x5c] ss:$36 sps:$4 sm:$0xff]  }
 0x50a   :  { %2767 = vmatpush1.bf16.msra.mxu1 %v3943_v60  ;;  %v4012_v60 = vld [vmem:[#allocation8 + $0x58] ss:$36 sps:$4 sm:$0xff]  }
 0x50b   :  { %2768 = vmatprep.subr.bf16.mxu1 %v3951_v61  ;;  %v4017_v61 = vld [vmem:[#allocation8 + $0xa4] ss:$36 sps:$4 sm:$0xff]  }
 0x50e   :  { %2769 = vmatpush1.bf16.msra.mxu1 %v3949_v62  ;;  %v4015_v62 = vld [vmem:[#allocation8 + $0xa0] ss:$36 sps:$4 sm:$0xff]  }
 0x50f   :  { %2770 = vmatprep.subr.bf16.mxu1 %v3957_v1  ;;  %v4023_v1 = vld [vmem:[#allocation8 + $0x134] ss:$36 sps:$4 sm:$0xff]  }
 0x512   :  { %2771 = vmatpush1.bf16.msra.mxu1 %v3955_v2  ;;  %v4021_v2 = vld [vmem:[#allocation8 + $0x130] ss:$36 sps:$4 sm:$0xff]  }
 0x513   :  { %2783 = vmatprep.subr.bf16.mxu1 %v3963_v5  ;;  %v4029_v5 = vld [vmem:[#allocation8 + $0x1c4] ss:$36 sps:$4 sm:$0xff]  }
 0x5a8   :  { %v1780_v9 = vpop.f32.mrb[12].mxu1 }
 0x5a9   :  { %v1781_v10 = vadd.f32 %v1780_v9, %v1659_v7  ;;  %v1782_v11 = vpop.f32.mrb[13].mxu1  ;;  %v4035_v9 = vld [vmem:[#allocation8 + $0x254] ss:$36 sps:$4 sm:$0xff]  }
 0x5aa   :  { %v1783_v12 = vadd.f32 %v1782_v11, %v1663_v8  ;;  %v1784_v13 = vpop.f32.mrb[14].mxu1  ;;  %v4038_v11 = vld [vmem:[#allocation8 + $0x29c] ss:$36 sps:$4 sm:$0xff]  }
 0x5ab   :  { %v1785_v14 = vadd.f32 %v1784_v13, %v1659_v7  ;;  %v1786_v15 = vpop.f32.mrb[15].mxu1  ;;  %v1789_v17 = vmax.f32 %v1781_v10, 0.0  ;;  %v4032_v7 = vld [vmem:[#allocation8 + $0x20c] ss:$36 sps:$4 sm:$0xff]   ;;  %v4041_v13 = vld [vmem:[#allocation8 + $0x2e4] ss:$36 sps:$4 sm:$0xff]  }
 0x5ac   :  { %v1787_v16 = vadd.f32 %v1786_v15, %v1663_v8  ;;  %v1790_v19 = vmax.f32 %v1783_v12, 0.0  ;;  %v4030_v8 = vld [vmem:[#allocation8 + $0x208] ss:$36 sps:$4 sm:$0xff]   ;;  %v4033_v10 = vld [vmem:[#allocation8 + $0x250] ss:$36 sps:$4 sm:$0xff]  }
 0x5ad   :  { %v1791_v18 = vmax.f32 %v1785_v14, 0.0  ;;  %v4036_v12 = vld [vmem:[#allocation8 + $0x298] ss:$36 sps:$4 sm:$0xff]   ;;  %v4039_v14 = vld [vmem:[#allocation8 + $0x2e0] ss:$36 sps:$4 sm:$0xff]  }
 0x5ae   :  { %v1792_v20 = vmax.f32 %v1787_v16, 0.0  ;;  %v4044_v15 = vld [vmem:[#allocation8 + $0x32c] ss:$36 sps:$4 sm:$0xff]  }
 0x5af   :  { %v4522_v21 = vpack.c.bf16 %v1791_v18, %v1789_v17  ;;  %v4042_v16 = vld [vmem:[#allocation8 + $0x328] ss:$36 sps:$4 sm:$0xff]   ;;  %v4047_v17 = vld [vmem:[#allocation8 + $0x374] ss:$36 sps:$4 sm:$0xff]  }
 0x5b0   :  { %v4524_v22 = vpack.c.bf16 %v1792_v20, %v1790_v19  ;;  %v4045_v18 = vld [vmem:[#allocation8 + $0x370] ss:$36 sps:$4 sm:$0xff]   ;;  %v4050_v19 = vld [vmem:[#allocation8 + $0x3bc] ss:$36 sps:$4 sm:$0xff]  }
 0x5b1   :  { %v4048_v20 = vld [vmem:[#allocation8 + $0x3b8] ss:$36 sps:$4 sm:$0xff]  }
 0x5b2   :  { %2772 = vmatprep.mubr.bf16.mxu1 %v4524_v22  ;;  %2901 = vmatprep.mubr.bf16.mxu0 %v4524_v22 }
 0x5b3   :  { %2773 = vmatmul.mubr.bf16.vlgmr.msra.gmra.mrb[16].mxu1 %v4522_v21  ;;  %2902 = vmatmul.mubr.bf16.vlgmr.msra.gmra.mrb[4].mxu0 %v4522_v21 }
 0x5b4   :  { %2784 = vmatpush1.bf16.msra.mxu1 %v3961_v24  ;;  %2815 = vmatprep.mubr.bf16.mxu1 %v4524_v22  ;;  %v4053_v24 = vld [vmem:[#allocation8 + $0x404] ss:$36 sps:$4 sm:$0xff]  }
 0x5b5   :  { %2785 = vmatprep.subr.bf16.mxu1 %v3966_v25  ;;  %v4051_v25 = vld [vmem:[#allocation8 + $0x400] ss:$36 sps:$4 sm:$0xff]  }
 0x5b8   :  { %2786 = vmatpush1.bf16.msra.mxu1 %v3964_v26  ;;  %v4056_v26 = vld [vmem:[#allocation8 + $0x44c] ss:$36 sps:$4 sm:$0xff]  }
 0x5b9   :  { %2787 = vmatprep.subr.bf16.mxu1 %v3969_v27  ;;  %v4054_v27 = vld [vmem:[#allocation8 + $0x448] ss:$36 sps:$4 sm:$0xff]  }
 0x5bc   :  { %2788 = vmatpush1.bf16.msra.mxu1 %v3967_v28  ;;  %v4057_v28 = vld [vmem:[#allocation8 + $0x260] ss:$36 sps:$4 sm:$0xff]  }
 0x5bd   :  { %2789 = vmatprep.subr.bf16.mxu1 %v3972_v29  ;;  %v4058_v29 = vld [vmem:[#allocation8 + $0x20] ss:$36 sps:$4 sm:$0xff]  }
 0x5c0   :  { %2790 = vmatpush1.bf16.msra.mxu1 %v3970_v30  ;;  %v4059_v30 = vld [vmem:[#allocation8 + $0x2a8] ss:$36 sps:$4 sm:$0xff]  }
 0x5c1   :  { %2791 = vmatprep.subr.bf16.mxu1 %v3975_v31  ;;  %v4060_v31 = vld [vmem:[#allocation8 + $0x68] ss:$36 sps:$4 sm:$0xff]  }
 0x5c4   :  { %2792 = vmatpush1.bf16.msra.mxu1 %v3973_v32  ;;  %v4061_v32 = vld [vmem:[#allocation8 + $0x2f0] ss:$36 sps:$4 sm:$0xff]  }
 0x5c5   :  { %2793 = vmatprep.subr.bf16.mxu1 %v3978_v33  ;;  %v4062_v33 = vld [vmem:[#allocation8 + $0xb0] ss:$36 sps:$4 sm:$0xff]  }
 0x5c8   :  { %2794 = vmatpush1.bf16.msra.mxu1 %v3976_v34  ;;  %v4063_v34 = vld [vmem:[#allocation8 + $0x338] ss:$36 sps:$4 sm:$0xff]  }
 0x5c9   :  { %2795 = vmatprep.subr.bf16.mxu1 %v3981_v35  ;;  %v4064_v35 = vld [vmem:[#allocation8 + $0xf8] ss:$36 sps:$4 sm:$0xff]  }
 0x5cc   :  { %2796 = vmatpush1.bf16.msra.mxu1 %v3979_v36  ;;  %v4065_v36 = vld [vmem:[#allocation8 + $0x380] ss:$36 sps:$4 sm:$0xff]  }
 0x5cd   :  { %2797 = vmatprep.subr.bf16.mxu1 %v3984_v37  ;;  %v4066_v37 = vld [vmem:[#allocation8 + $0x140] ss:$36 sps:$4 sm:$0xff]  }
 0x5d0   :  { %2798 = vmatpush1.bf16.msra.mxu1 %v3982_v38  ;;  %v4067_v38 = vld [vmem:[#allocation8 + $0x3c8] ss:$36 sps:$4 sm:$0xff]  }
 0x5d1   :  { %2799 = vmatprep.subr.bf16.mxu1 %v3987_v39  ;;  %v4068_v39 = vld [vmem:[#allocation8 + $0x188] ss:$36 sps:$4 sm:$0xff]  }
 0x5d4   :  { %2800 = vmatpush1.bf16.msra.mxu1 %v3985_v40  ;;  %v4069_v40 = vld [vmem:[#allocation8 + $0x410] ss:$36 sps:$4 sm:$0xff]  }
 0x5d5   :  { %2801 = vmatprep.subr.bf16.mxu1 %v3990_v41  ;;  %v4071_v41 = vld [vmem:[#allocation8 + $0x458] ss:$36 sps:$4 sm:$0xff]  }
 0x5d8   :  { %2802 = vmatpush1.bf16.msra.mxu1 %v3988_v42  ;;  %v4072_v42 = vld [vmem:[#allocation8 + $0x218] ss:$36 sps:$4 sm:$0xff]  }
 0x5d9   :  { %2803 = vmatprep.subr.bf16.mxu1 %v3993_v45 }
 0x5dc   :  { %2804 = vmatpush1.bf16.msra.mxu1 %v3991_v47 }
 0x5dd   :  { %2805 = vmatprep.subr.bf16.mxu1 %v3996_v48 }
 0x5e0   :  { %2806 = vmatpush1.bf16.msra.mxu1 %v3994_v49 }
 0x5e1   :  { %2807 = vmatprep.subr.bf16.mxu1 %v3999_v50 }
 0x5e4   :  { %2808 = vmatpush1.bf16.msra.mxu1 %v3997_v51 }
 0x5e5   :  { %2809 = vmatprep.subr.bf16.mxu1 %v4002_v52 }
 0x5e8   :  { %2810 = vmatpush1.bf16.msra.mxu1 %v4000_v53 }
 0x5e9   :  { %2811 = vmatprep.subr.bf16.mxu1 %v4005_v23 }
 0x5ec   :  { %2812 = vmatpush1.bf16.msra.mxu1 %v4003_v54 }
 0x5ed   :  { %2813 = vmatprep.subr.bf16.mxu1 %v4008_v55 }
 0x5f0   :  { %2814 = vmatpush1.bf16.msra.mxu1 %v4006_v56 }
 0x5f1   :  { %2826 = vmatprep.subr.bf16.mxu1 %v4011_v57 }
 0x5f3   :  { %2816 = vmatmul.mubr.bf16.vlgmr.msra.gmra.mrb[20].mxu1 %v4522_v21 }
 0x5f4   :  { %2827 = vmatpush1.bf16.msra.mxu1 %v4009_v58  ;;  %2858 = vmatprep.mubr.bf16.mxu1 %v4524_v22 }
 0x5f5   :  { %2828 = vmatprep.subr.bf16.mxu1 %v4014_v59 }
 0x5f8   :  { %2829 = vmatpush1.bf16.msra.mxu1 %v4012_v60 }
 0x5f9   :  { %2830 = vmatprep.subr.bf16.mxu1 %v4017_v61  ;;  %v1969_v61 = vsub.s32 2, %v4451_v43 }
 0x5fc   :  { %2831 = vmatpush1.bf16.msra.mxu1 %v4015_v62  ;;  %v1977_v62 = vsub.s32 4, %v4451_v43 }
 0x5fd   :  { %2832 = vmatprep.subr.bf16.mxu1 %v4020_v63  ;;  %v1955_v63 = vld [vmem:[%s4648_s12] sm:$0xff] }
 0x600   :  { %2833 = vmatpush1.bf16.msra.mxu1 %v4018_v0  ;;  %v1970_v0 = vrot.slane %v1955_v63, %v1969_v61 }
 0x601   :  { %2834 = vmatprep.subr.bf16.mxu1 %v4023_v1  ;;  %v1981_v1 = vsub.s32 5, %v4451_v43 }
 0x604   :  { %2835 = vmatpush1.bf16.msra.mxu1 %v4021_v2  ;;  %v1962_v2 = vrot.slane %v1955_v63, %v4454_v44 }
 0x605   :  { %2836 = vmatprep.subr.bf16.mxu1 %v4026_v3 }
 0x608   :  { %2837 = vmatpush1.bf16.msra.mxu1 %v4024_v4  ;;  %v1978_v4 = vrot.slane %v1955_v63, %v1977_v62 }
 0x609   :  { %2838 = vmatprep.subr.bf16.mxu1 %v4029_v5  ;;  %v1985_v5 = vsub.s32 6, %v4451_v43 }
 0x60c   :  { %2839 = vmatpush1.bf16.msra.mxu1 %v4027_v6  ;;  %v1966_v6 = vrot.slane %v1955_v63, %v4460_v46 }
 0x60d   :  { %2840 = vmatprep.subr.bf16.mxu1 %v4032_v7 }
 0x610   :  { %2841 = vmatpush1.bf16.msra.mxu1 %v4030_v8  ;;  %v1982_v8 = vrot.slane %v1955_v63, %v1981_v1 }
 0x611   :  { %2842 = vmatprep.subr.bf16.mxu1 %v4035_v9  ;;  %v1989_v9 = vsub.s32 7, %v4451_v43 }
 0x614   :  { %2843 = vmatpush1.bf16.msra.mxu1 %v4033_v10 }
 0x615   :  { %2844 = vmatprep.subr.bf16.mxu1 %v4038_v11 }
 0x618   :  { %2845 = vmatpush1.bf16.msra.mxu1 %v4036_v12 }
 0x619   :  { %2846 = vmatprep.subr.bf16.mxu1 %v4041_v13 }
 0x61c   :  { %2847 = vmatpush1.bf16.msra.mxu1 %v4039_v14  ;;  %v1986_v14 = vrot.slane %v1955_v63, %v1985_v5 }
 0x61d   :  { %2848 = vmatprep.subr.bf16.mxu1 %v4044_v15 }
 0x620   :  { %2849 = vmatpush1.bf16.msra.mxu1 %v4042_v16 }
 0x621   :  { %2850 = vmatprep.subr.bf16.mxu1 %v4047_v17 }
 0x624   :  { %2851 = vmatpush1.bf16.msra.mxu1 %v4045_v18 }
 0x625   :  { %2852 = vmatprep.subr.bf16.mxu1 %v4050_v19  ;;  %v1990_v19 = vrot.slane %v1955_v63, %v1989_v9 }
 0x628   :  { %2853 = vmatpush1.bf16.msra.mxu1 %v4048_v20 }
 0x629   :  { %2854 = vmatprep.subr.bf16.mxu1 %v4053_v24 }
 0x62c   :  { %2855 = vmatpush1.bf16.msra.mxu1 %v4051_v25 }
 0x62d   :  { %2856 = vmatprep.subr.bf16.mxu1 %v4056_v26 }
 0x630   :  { %2857 = vmatpush1.bf16.msra.mxu1 %v4054_v27 }
 0x631   :  { %3490 = vmatprep.subr.bf16.mxu1 %v4057_v28 }
 0x633   :  { %2859 = vmatmul.mubr.bf16.vlgmr.msra.gmra.mrb[24].mxu1 %v4522_v21 }
 0x634   :  { %3491 = vmatpush3.bf16.msra.mxu1 %v4058_v29  ;;  %2944 = vmatprep.mubr.bf16.mxu1 %v4524_v22  ;;  %v4070_v22 = vld [vmem:[#allocation8 + $0x1d0] ss:$36 sps:$4 sm:$0xff]  }
 0x635   :  { %3492 = vmatprep.subr.bf16.mxu1 %v4059_v30 }
 0x638   :  { %3493 = vmatpush3.bf16.msra.mxu1 %v4060_v31 }
 0x639   :  { %3494 = vmatprep.subr.bf16.mxu1 %v4061_v32 }
 0x63c   :  { %3495 = vmatpush3.bf16.msra.mxu1 %v4062_v33 }
 0x63d   :  { %3496 = vmatprep.subr.bf16.mxu1 %v4063_v34 }
 0x640   :  { %3497 = vmatpush3.bf16.msra.mxu1 %v4064_v35 }
 0x641   :  { %3498 = vmatprep.subr.bf16.mxu1 %v4065_v36 }
 0x644   :  { %3499 = vmatpush3.bf16.msra.mxu1 %v4066_v37 }
 0x645   :  { %3500 = vmatprep.subr.bf16.mxu1 %v4067_v38 }
 0x648   :  { %3501 = vmatpush3.bf16.msra.mxu1 %v4068_v39 }
 0x649   :  { %3502 = vmatprep.subr.bf16.mxu1 %v4069_v40 }
 0x64c   :  { %3503 = vmatpush3.bf16.msra.mxu1 %v4070_v22 }
 0x64d   :  { %3504 = vmatprep.subr.bf16.mxu1 %v4071_v41 }
 0x650   :  { %3505 = vmatpush3.bf16.msra.mxu1 %v4072_v42 }
 0x653   :  { %2945 = vmatmul.mubr.bf16.vlgmr.msra.gmra.mrb[28].mxu1 %v4522_v21  ;;  %v1973_v21 = vsub.s32 3, %v4451_v43  ;;  %v3305_v43 = vld [vmem:[%s4648_s12 + $0x8] ss:$0 sm:$0xff]  ;;  %s4245_s12 = smov [#allocation10]  }
 0x654   :  { %s3092_s14 = sshll.u32 %s4245_s12, 4  ;;  %s3093_s14 = int_to_ptr.vmem [resolvable:$true] %s3092_s14 }
 0x655   :  { %v1974_v3 = vrot.slane %v1955_v63, %v1973_v21  ;;  %s4201_s2 = scalar_lea.vmem %s3093_s14, 2304  ;;  %p4206_p5 = scmp.lt.s32.totalorder %s3093_s14, %s3093_s14 }
 0x656   :  { %p4202_p4 = scmp.ne.s32.totalorder %s3093_s14, %s4201_s2  ;;  %p4207_p6 = scmp.lt.s32.totalorder %s4201_s2, %s4201_s2 }
 0x658   :  { %p4208_p7 = por %p4207_p6, %p4206_p5 }
 0x65a   :  { %p4209_p8 = pnand %p4208_p7, %p4202_p4 }
 0x686   :  { %v2774_v45 = vpop.f32.mrb[16].mxu1  ;;  %v2903_v47 = vpop.f32.mrb[4].mxu0 }
 0x687   :  { %v2776_v48 = vpop.f32.mrb[17].mxu1  ;;  %v2905_v49 = vpop.f32.mrb[5].mxu0  ;;  %v2775_v10 = vadd.f32 %v2774_v45, %v1962_v2  ;;  %v2904_v30 = vadd.f32 %v2903_v47, %v1986_v14 }
 0x688   :  { %v2778_v50 = vpop.f32.mrb[18].mxu1  ;;  %v2907_v51 = vpop.f32.mrb[6].mxu0  ;;  %v2777_v15 = vadd.f32 %v2776_v48, %v1966_v6  ;;  %v2906_v35 = vadd.f32 %v2905_v49, %v1990_v19 }
 0x689   :  { %v2780_v52 = vpop.f32.mrb[19].mxu1  ;;  %v2909_v53 = vpop.f32.mrb[7].mxu0  ;;  %v2779_v16 = vadd.f32 %v2778_v50, %v1962_v2  ;;  %v2908_v38 = vadd.f32 %v2907_v51, %v1986_v14 }
 0x68a   :  { %v2781_v27 = vadd.f32 %v2780_v52, %v1966_v6  ;;  %v2910_v52 = vadd.f32 %v2909_v53, %v1990_v19 }
 0x6c6   :  { %v2817_v23 = vpop.f32.mrb[20].mxu1 }
 0x6c7   :  { %v2819_v54 = vpop.f32.mrb[21].mxu1  ;;  %v2818_v7 = vadd.f32 %v2817_v23, %v1970_v0 }
 0x6c8   :  { %v2821_v55 = vpop.f32.mrb[22].mxu1  ;;  %v2820_v11 = vadd.f32 %v2819_v54, %v1974_v3 }
 0x6c9   :  { %v2823_v56 = vpop.f32.mrb[23].mxu1  ;;  %v2822_v12 = vadd.f32 %v2821_v55, %v1970_v0  ;;  %v2953_v17 = vmax.f32 %v2775_v10, %v2818_v7 }
 0x6ca   :  { %v2824_v20 = vadd.f32 %v2823_v56, %v1974_v3  ;;  %v2954_v24 = vmax.f32 %v2777_v15, %v2820_v11 }
 0x6cb   :  { %v2963_v25 = vmax.f32 %v2779_v16, %v2822_v12 }
 0x6cc   :  { %v2964_v36 = vmax.f32 %v2781_v27, %v2824_v20 }
 0x706   :  { %v2860_v57 = vpop.f32.mrb[24].mxu1 }
 0x707   :  { %v2862_v58 = vpop.f32.mrb[25].mxu1  ;;  %v2861_v13 = vadd.f32 %v2860_v57, %v1978_v4 }
 0x708   :  { %v2864_v59 = vpop.f32.mrb[26].mxu1  ;;  %v2863_v18 = vadd.f32 %v2862_v58, %v1982_v8 }
 0x709   :  { %v2866_v60 = vpop.f32.mrb[27].mxu1  ;;  %v2865_v44 = vadd.f32 %v2864_v59, %v1978_v4  ;;  %v2955_v26 = vmax.f32 %v2953_v17, %v2861_v13 }
 0x70a   :  { %v2867_v28 = vadd.f32 %v2866_v60, %v1982_v8  ;;  %v2956_v31 = vmax.f32 %v2954_v24, %v2863_v18 }
 0x70b   :  { %v2965_v32 = vmax.f32 %v2963_v25, %v2865_v44  ;;  %v2957_v22 = vmax.f32 %v2955_v26, %v2904_v30 }
 0x70c   :  { %v2966_v41 = vmax.f32 %v2964_v36, %v2867_v28  ;;  %v2958_v48 = vmax.f32 %v2956_v31, %v2906_v35 }
 0x70d   :  { %v2967_v42 = vmax.f32 %v2965_v32, %v2908_v38 }
 0x70e   :  { %v2968_v47 = vmax.f32 %v2966_v41, %v2910_v52 }
 0x726   :  { %v3506_v46 = vpop.f32.mrb[28].mxu1 }
 0x727   :  { %v3507_v29 = vpop.f32.mrb[29].mxu1 }
 0x728   :  { %v3508_v33 = vadd.f32 %v3507_v29, %v3506_v46  ;;  %v3509_v34 = vpop.f32.mrb[30].mxu1 }
 0x729   :  { %v3510_v37 = vpop.f32.mrb[31].mxu1 }
 0x72a   :  { %v2947_v39 = vadd.f32 %v3508_v33, %v3305_v43  ;;  %v3511_v40 = vadd.f32 %v3510_v37, %v3509_v34 }
 0x72c   :  { %v2950_v45 = vadd.f32 %v3511_v40, %v3305_v43  ;;  %v2959_v50 = vmax.f32 %v2957_v22, %v2947_v39 }
 0x72e   :  { %v2960_v23 = vmax.f32 %v2959_v50, %v2958_v48  ;;  %v2969_v54 = vmax.f32 %v2967_v42, %v2950_v45 }
 0x730   :  { %2961 = vmax.xlane.f32.xlu0 %v2960_v23  ;;  %v2970_v55 = vmax.f32 %v2969_v54, %v2968_v47 }
 0x734   :  { %2971 = vmax.xlane.f32.xlu0 %v2970_v55 }
 0x7bd   :  { %v2962_v56 = vpop.xlane.xlu0 %2961 }
 0x7be   :  { %v4550_v49 = vsub.f32 %v2775_v10, %v2962_v56  ;;  %v4552_v57 = vsub.f32 %v2777_v15, %v2962_v56  ;;  %v4554_v51 = vsub.f32 %v2818_v7, %v2962_v56  ;;  %v4565_v63 = vsub.f32 %v2820_v11, %v2962_v56 }
 0x7bf   :  { %v4571_v3 = vsub.f32 %v2861_v13, %v2962_v56  ;;  %v4574_v5 = vsub.f32 %v2863_v18, %v2962_v56  ;;  %v4578_v8 = vsub.f32 %v2904_v30, %v2962_v56  ;;  %v4583_v11 = vsub.f32 %v2906_v35, %v2962_v56 }
 0x7c0   :  { %v2991_v58 = vmul.f32 1.442695, %v4550_v49  ;;  %v2993_v59 = vmul.f32 1.442695, %v4552_v57  ;;  %v2995_v53 = vmul.f32 1.442695, %v4554_v51  ;;  %v4588_v14 = vsub.f32 %v2947_v39, %v2962_v56 }
 0x7c1   :  { %v2972_v60 = vpop.xlane.xlu0 %2971  ;;  %v2997_v6 = vmul.f32 1.442695, %v4565_v63  ;;  %v2999_v10 = vmul.f32 1.442695, %v4571_v3  ;;  %v3001_v13 = vmul.f32 1.442695, %v4574_v5 }
 0x7c2   :  { %v4559_v61 = vsub.f32 %v2779_v16, %v2972_v60  ;;  %v4561_v21 = vsub.f32 %v2781_v27, %v2972_v60  ;;  %v4563_v62 = vsub.f32 %v2822_v12, %v2972_v60  ;;  %v4567_v0 = vsub.f32 %v2824_v20, %v2972_v60 }
 0x7c3   :  { %4073 = vpow2.f32 %v2991_v58  ;;  %v4580_v9 = vsub.f32 %v2865_v44, %v2972_v60  ;;  %v4585_v12 = vsub.f32 %v2867_v28, %v2972_v60  ;;  %v3003_v15 = vmul.f32 1.442695, %v4578_v8 }
 0x7c4   :  { %v3009_v1 = vmul.f32 1.442695, %v4559_v61  ;;  %v3011_v2 = vmul.f32 1.442695, %v4561_v21  ;;  %4075 = vpow2.f32 %v2993_v59  ;;  %v3013_v4 = vmul.f32 1.442695, %v4563_v62 }
 0x7c5   :  { %4077 = vpow2.f32 %v2995_v53  ;;  %v3015_v7 = vmul.f32 1.442695, %v4567_v0  ;;  %v4591_v16 = vsub.f32 %v2908_v38, %v2972_v60  ;;  %v3017_v17 = vmul.f32 1.442695, %v4580_v9 }
 0x7c6   :  { %4079 = vpow2.f32 %v3009_v1  ;;  %v3005_v44 = vmul.f32 1.442695, %v4583_v11  ;;  %v4595_v20 = vsub.f32 %v2910_v52, %v2972_v60  ;;  %v3019_v24 = vmul.f32 1.442695, %v4585_v12 }
 0x7c7   :  { %4081 = vpow2.f32 %v3011_v2  ;;  %v3007_v26 = vmul.f32 1.442695, %v4588_v14  ;;  %v4599_v28 = vsub.f32 %v2950_v45, %v2972_v60  ;;  %v3021_v43 = vmul.f32 1.442695, %v4591_v16 }
 0x7c8   :  { %4083 = vpow2.f32 %v3013_v4  ;;  %v3023_v31 = vmul.f32 1.442695, %v4595_v20 }
 0x7c9   :  { %4085 = vpow2.f32 %v2997_v6  ;;  %v3025_v35 = vmul.f32 1.442695, %v4599_v28 }
 0x7ca   :  { %4087 = vpow2.f32 %v3015_v7 }
 0x7cb   :  { %4089 = vpow2.f32 %v2999_v10 }
 0x7cc   :  { %4091 = vpow2.f32 %v3001_v13 }
 0x7cd   :  { %v4074_v18 = vpop.eup %4073  ;;  %4093 = vpow2.f32 %v3003_v15 }
 0x7ce   :  { %v4076_v19 = vpop.eup %4075  ;;  %4095 = vpow2.f32 %v3017_v17 }
 0x7cf   :  { %v4078_v25 = vpop.eup %4077  ;;  %v3027_v46 = vadd.f32 %v4076_v19, %v4074_v18  ;;  %4097 = vpow2.f32 %v3005_v44 }
 0x7d0   :  { %v4080_v27 = vpop.eup %4079  ;;  %4099 = vpow2.f32 %v3019_v24 }
 0x7d1   :  { %v4082_v29 = vpop.eup %4081  ;;  %v3028_v30 = vadd.f32 %v4078_v25, %v3027_v46  ;;  %4101 = vpow2.f32 %v3007_v26 }
 0x7d2   :  { %v3037_v32 = vadd.f32 %v4082_v29, %v4080_v27  ;;  %v4084_v33 = vpop.eup %4083  ;;  %4103 = vpow2.f32 %v3021_v43 }
 0x7d3   :  { %v4086_v34 = vpop.eup %4085  ;;  %4105 = vpow2.f32 %v3023_v31 }
 0x7d4   :  { %v3038_v36 = vadd.f32 %v4084_v33, %v3037_v32  ;;  %v4088_v37 = vpop.eup %4087  ;;  %v3029_v38 = vadd.f32 %v4086_v34, %v3028_v30  ;;  %4107 = vpow2.f32 %v3025_v35 }
 0x7d5   :  { %v4090_v39 = vpop.eup %4089 }
 0x7d6   :  { %v3030_v40 = vadd.f32 %v4090_v39, %v3029_v38  ;;  %v3039_v22 = vadd.f32 %v4088_v37, %v3038_v36  ;;  %v4092_v41 = vpop.eup %4091 }
 0x7d7   :  { %v4094_v42 = vpop.eup %4093 }
 0x7d8   :  { %v3031_v45 = vadd.f32 %v4092_v41, %v3030_v40  ;;  %v4096_v48 = vpop.eup %4095 }
 0x7d9   :  { %v4098_v50 = vpop.eup %4097  ;;  %v3040_v23 = vadd.f32 %v4096_v48, %v3039_v22 }
 0x7da   :  { %v3032_v52 = vadd.f32 %v4094_v42, %v3031_v45  ;;  %v4100_v54 = vpop.eup %4099 }
 0x7db   :  { %v4102_v47 = vpop.eup %4101  ;;  %v3041_v56 = vadd.f32 %v4100_v54, %v3040_v23 }
 0x7dc   :  { %v3033_v55 = vadd.f32 %v4098_v50, %v3032_v52  ;;  %v4104_v58 = vpop.eup %4103 }
 0x7dd   :  { %v3042_v60 = vadd.f32 %v4104_v58, %v3041_v56  ;;  %v4106_v53 = vpop.eup %4105 }
 0x7de   :  { %v3034_v59 = vadd.f32 %v4102_v47, %v3033_v55  ;;  %v4108_v2 = vpop.eup %4107 }
 0x7df   :  { %v3043_v1 = vadd.f32 %v4106_v53, %v3042_v60 }
 0x7e0   :  { %3035 = vadd.xlane.f32.xlu1 %v3034_v59 }
 0x7e1   :  { %v3044_v4 = vadd.f32 %v4108_v2, %v3043_v1 }
 0x7e4   :  { %3045 = vadd.xlane.f32.xlu1 %v3044_v4 }
 0x86d   :  { %v3036_v6 = vpop.xlane.xlu1 %3035 }
 0x86e   :  { %4109 = vlog2.f32 %v3036_v6 }
 0x871   :  { %v3046_v7 = vpop.xlane.xlu1 %3045 }
 0x872   :  { %4111 = vlog2.f32 %v3046_v7 }
 0x878   :  { %v4110_v10 = vpop.eup %4109 }
 0x879   :  { %v3048_v13 = vmul.f32 0.6931472, %v4110_v10 }
 0x87b   :  { %v3051_v15 = vsub.f32 %v4550_v49, %v3048_v13  ;;  %v3052_v17 = vsub.f32 %v4552_v57, %v3048_v13  ;;  %v3053_v18 = vsub.f32 %v4554_v51, %v3048_v13  ;;  %v3054_v44 = vsub.f32 %v4565_v63, %v3048_v13 }
 0x87c   :  { %v4112_v19 = vpop.eup %4111  ;;  %v3055_v24 = vsub.f32 %v4571_v3, %v3048_v13  ;;  %v3056_v25 = vsub.f32 %v4574_v5, %v3048_v13  ;;  %v3057_v26 = vsub.f32 %v4578_v8, %v3048_v13  ;;  %v3058_v46 = vsub.f32 %v4583_v11, %v3048_v13 }
 0x87d   :  { %v3059_v27 = vsub.f32 %v4588_v14, %v3048_v13  ;;  %3069 = vst [vmem:[#allocation10] sm:$0xff] %v3051_v15  ;;  %3070 = vst [vmem:[#allocation10 + $0x8] sm:$0xff] %v3052_v17  ;;  %v3050_v49 = vmul.f32 0.6931472, %v4112_v19 }
 0x87e   :  { %3071 = vst [vmem:[#allocation10 + $0x10] sm:$0xff] %v3053_v18  ;;  %3072 = vst [vmem:[#allocation10 + $0x18] sm:$0xff] %v3054_v44 }
 0x87f   :  { %3073 = vst [vmem:[#allocation10 + $0x20] sm:$0xff] %v3055_v24  ;;  %3074 = vst [vmem:[#allocation10 + $0x28] sm:$0xff] %v3056_v25  ;;  %v3060_v57 = vsub.f32 %v4559_v61, %v3050_v49  ;;  %v3061_v51 = vsub.f32 %v4561_v21, %v3050_v49  ;;  %v3062_v63 = vsub.f32 %v4563_v62, %v3050_v49 }
 0x880   :  { %3075 = vst [vmem:[#allocation10 + $0x30] sm:$0xff] %v3057_v26  ;;  %3076 = vst [vmem:[#allocation10 + $0x38] sm:$0xff] %v3058_v46  ;;  %v3063_v3 = vsub.f32 %v4567_v0, %v3050_v49  ;;  %v3064_v5 = vsub.f32 %v4580_v9, %v3050_v49  ;;  %v3065_v8 = vsub.f32 %v4585_v12, %v3050_v49 }
 0x881   :  { %3077 = vst.msk [vmem:[#allocation10 + $0x40] sm:$0xff] %vm994_vm2, %v3059_v27  ;;  %v3066_v11 = vsub.f32 %v4591_v16, %v3050_v49  ;;  %v3067_v14 = vsub.f32 %v4595_v20, %v3050_v49  ;;  %v3068_v43 = vsub.f32 %v4599_v28, %v3050_v49  ;;  %3078 = vst [vmem:[#allocation10 + $0x48] sm:$0xff] %v3060_v57 }
 0x882   :  { %3079 = vst [vmem:[#allocation10 + $0x50] sm:$0xff] %v3061_v51  ;;  %3080 = vst [vmem:[#allocation10 + $0x58] sm:$0xff] %v3062_v63 }
 0x883   :  { %3081 = vst [vmem:[#allocation10 + $0x60] sm:$0xff] %v3063_v3  ;;  %3082 = vst [vmem:[#allocation10 + $0x68] sm:$0xff] %v3064_v5 }
 0x884   :  { %3083 = vst [vmem:[#allocation10 + $0x70] sm:$0xff] %v3065_v8  ;;  %3084 = vst [vmem:[#allocation10 + $0x78] sm:$0xff] %v3066_v11 }
 0x885   :  { %3085 = vst [vmem:[#allocation10 + $0x80] sm:$0xff] %v3067_v14  ;;  %3086 = vst.msk [vmem:[#allocation10 + $0x88] sm:$0xff] %vm994_vm2, %v3068_v43 }
 0x886   :  { %4212 = shalt.err (!%p4209_p8)
}
 0x887   :  { %s4213_s16 = scalar_lea.hbm %s4649_s13, 2304 }
 0x888   :  { %p4214_p9 = scmp.ne.s32.totalorder %s4649_s13, %s4213_s16  ;;  %p4217_p10 = scmp.lt.u32.totalorder %s4213_s16, %s4649_s13 }
 0x88a   :  { %p4219_p11 = pnand %p4217_p10, %p4214_p9 }
 0x88c   :  { %4222 = shalt.err (!%p4219_p11)
}
 0x88d   :  { %s4246_s24 = smov 1152   ;;  %s4247_s25 = smov 72  }
 0x88e   :  { %3098 = dma.vmem_to_hbm [thread:$0]  %s3093_s14, 2304, %s4649_s13, [#allocation4], %s4246_s24, %s4246_s24, %s4247_s25  }
 0x88f   :  { %4229 = dma.done.wait [#allocation4], 2304  }
 0x890   :  { %4230 = vsyncadd [#allocation4], 4294964992 }
 0x891   :  { %3102 = vsyncpa [#allocation3], 1 }
 0x892   :  { %3103 = vsyncpa [#allocation6], 1 }
 0x893   :  { %3104 = vsyncpa [#allocation9], 1 }
 0x894   :  { %3105 = vsyncpa [#allocation4], 1 }

</bundles_post_ra>
